<compile_context>
chip_gen: v6e
topology: v6e:2x2x1
jax: 0.10.0
libtpu: 0.0.40
codegen_flags: <defaults>
</compile_context>

<pallas_src>
import jax
import jax.numpy as jnp
from jax import lax
from jax.experimental import pallas as pl
from jax.experimental.pallas import tpu as pltpu


def _ode_kernel(x_ref, s1_ref, h1_ref, w_ref, bias_ref, o_ref, pad_ref, col_ref):
    # x_ref block: (H, W, C) — one image per grid step (batch dim squeezed).
    H, W, C = x_ref.shape
    HW = H * W

    # conv1(t, x) is computed-but-discarded by the reference forward: skipped.

    # bn1 (eval-mode per-channel affine) + ReLU, applied to x (as in reference).
    y = jnp.maximum(x_ref[...] * s1_ref[...] + h1_ref[...], 0.0)      # (H, W, C)

    # SAME zero padding via a padded VMEM scratch (re-zeroed every step so the
    # border is valid on every core); shifts become 9 static window reads.
    pad_ref[...] = jnp.zeros(pad_ref.shape, pad_ref.dtype)
    pad_ref[1:H + 1, 1:W + 1, :] = y

    # im2col: stack the 9 taps along channels -> (H*W, 9*C) scratch.
    for k in range(9):
        kh, kw = divmod(k, 3)
        col_ref[:, k * C:(k + 1) * C] = (
            pad_ref[kh:kh + H, kw:kw + W, :].reshape(HW, C))

    # conv2 + bn2 (folded into w/bias on the host): a single MXU matmul with a
    # transposed RHS (q @ k.T style), producing a lane-dense (C, H*W) slab.
    out = lax.dot_general(
        w_ref[...], col_ref[...],
        dimension_numbers=(((1,), (1,)), ((), ())),
        preferred_element_type=jnp.float32)                            # (C, H*W)

    o_ref[...] = (out + bias_ref[...]).astype(o_ref.dtype)


def ode_function2_pallas(t, x_nchw, params):
    N, C, H, W = x_nchw.shape
    HW = H * W

    # NCHW -> NHWC for the kernel input (layout plumbing only).
    x = jnp.transpose(x_nchw, (0, 2, 3, 1)).astype(jnp.float32)

    w2 = params["w2"].astype(jnp.float32)            # (3, 3, C+1, C)  HWIO
    b2 = params["b2"].astype(jnp.float32)            # (C,)
    s2 = params["s2"].astype(jnp.float32)            # (C,)
    h2 = params["h2"].astype(jnp.float32)            # (C,)
    s1 = params["s1"].reshape(1, 1, C).astype(jnp.float32)
    h1 = params["h1"].reshape(1, 1, C).astype(jnp.float32)

    # ---- host-side parameter folding (parameter-only transforms) ----
    # Image-channel taps with bn2's scale folded in, as one (C_out, 9*C_in)
    # slab whose column order matches the kernel's im2col layout (k*C + ci).
    w_mat = (w2[:, :, 1:, :] * s2).transpose(3, 0, 1, 2).reshape(C, 9 * C)

    # Constant-t channel contribution (border-aware SAME conv of a constant
    # plane), conv2 bias and bn2 shift folded into one channels-first bias map.
    t_plane = jnp.full((1, H, W, 1), t, jnp.float32)
    t_term = lax.conv_general_dilated(
        t_plane, w2[:, :, 0:1, :], window_strides=(1, 1), padding="SAME",
        dimension_numbers=("NHWC", "HWIO", "NHWC"))[0]                 # (H, W, C)
    bias = ((t_term + b2) * s2 + h2).transpose(2, 0, 1).reshape(C, HW)

    out = pl.pallas_call(
        _ode_kernel,
        out_shape=jax.ShapeDtypeStruct((N, C, HW), jnp.float32),
        grid_spec=pltpu.PrefetchScalarGridSpec(
            num_scalar_prefetch=0,
            grid=(N,),
            in_specs=[
                pl.BlockSpec((None, H, W, C), lambda n: (n, 0, 0, 0)),  # x, 1 image/step
                pl.BlockSpec((1, 1, C), lambda n: (0, 0, 0)),           # bn1 scale
                pl.BlockSpec((1, 1, C), lambda n: (0, 0, 0)),           # bn1 shift
                pl.BlockSpec((C, 9 * C), lambda n: (0, 0)),             # fused conv2+bn2 weights
                pl.BlockSpec((C, HW), lambda n: (0, 0)),                # fused bias map
            ],
            out_specs=pl.BlockSpec((None, C, HW), lambda n: (n, 0, 0)),
            scratch_shapes=[
                pltpu.VMEM((H + 2, W + 2, C), jnp.float32),   # zero-padded activations
                pltpu.VMEM((HW, 9 * C), jnp.float32),         # im2col column buffer
            ],
        ),
        compiler_params=pltpu.CompilerParams(
            dimension_semantics=("parallel",)),
    )(x, s1, h1, w_mat, bias)

    return out.reshape(N, C, H, W)   # channels-first slab -> NCHW (pure reshape)


def init_params(key, C, eps=1e-5):
    """Deterministic synthetic parameters (shapes match OdeFunction2.__init__)."""
    k1, k2 = jax.random.split(key, 2)
    fan_in = (C + 1) * 9
    bound = 1.0 / jnp.sqrt(jnp.float32(fan_in))
    # conv2 weights, HWIO: (3, 3, C+1, C); PyTorch equivalent is (C, C+1, 3, 3).
    w2 = jax.random.uniform(k1, (3, 3, C + 1, C), jnp.float32, -bound, bound)
    b2 = jax.random.uniform(k2, (C,), jnp.float32, -bound, bound)
    # BatchNorm2d params / running stats (eval-mode), deterministic & non-trivial.
    ar = jnp.arange(C, dtype=jnp.float32)
    gamma1, beta1, mean1, var1 = 1.0 + 0.1 * ar, 0.05 * ar, 0.01 * ar, 1.0 + 0.02 * ar
    gamma2, beta2, mean2, var2 = 1.0 - 0.05 * ar, -0.03 * ar, 0.02 * ar, 1.0 + 0.03 * ar
    s1 = gamma1 / jnp.sqrt(var1 + eps)
    h1 = beta1 - mean1 * s1
    s2 = gamma2 / jnp.sqrt(var2 + eps)
    h2 = beta2 - mean2 * s2
    return dict(w2=w2, b2=b2, s1=s1, h1=h1, s2=s2, h2=h2)


def ode_function2_ref(t, x_nchw, params):
    """Pure-JAX reference (same eval-mode semantics) for verification."""
    x = jnp.transpose(x_nchw, (0, 2, 3, 1)).astype(jnp.float32)
    y = jnp.maximum(x * params["s1"] + params["h1"], 0.0)
    tt = jnp.full(y.shape[:3] + (1,), t, jnp.float32)
    ttx = jnp.concatenate([tt, y], axis=-1)
    conv = lax.conv_general_dilated(
        ttx, params["w2"], window_strides=(1, 1), padding="SAME",
        dimension_numbers=("NHWC", "HWIO", "NHWC")) + params["b2"]
    out = conv * params["s2"] + params["h2"]
    return jnp.transpose(out, (0, 3, 1, 2))


if __name__ == "__main__":
    key = jax.random.PRNGKey(0)
    kx, kp = jax.random.split(key)
    N, C, H, W = 2, 4, 16, 16
    x = jax.random.normal(kx, (N, C, H, W), jnp.float32)
    t = 0.5
    params = init_params(kp, C)

    out = ode_function2_pallas(t, x, params)
    jax.block_until_ready(out)

    ref = ode_function2_ref(t, x, params)
    assert out.shape == (N, C, H, W), out.shape
    err = float(jnp.max(jnp.abs(out - ref)))
    if err > 5e-4:
        raise AssertionError(f"mismatch vs reference: max abs err {err}")
    print("KERNEL_OK")
</pallas_src>

<mosaic_0001>
module attributes {stable_mosaic.version = 11 : i64} {
  func.func @_ode_kernel(%arg0: i32, %arg1: memref<1x16x16x4xf32, #tpu.memory_space<vmem>>, %arg2: memref<1x1x4xf32, #tpu.memory_space<vmem>>, %arg3: memref<1x1x4xf32, #tpu.memory_space<vmem>>, %arg4: memref<4x36xf32, #tpu.memory_space<vmem>>, %arg5: memref<4x256xf32, #tpu.memory_space<vmem>>, %arg6: memref<1x4x256xf32, #tpu.memory_space<vmem>>, %arg7: memref<18x18x4xf32, #tpu.memory_space<vmem>>, %arg8: memref<256x36xf32, #tpu.memory_space<vmem>>) attributes {dimension_semantics = [#tpu.dimension_semantics<parallel>], iteration_bounds = array<i64: 2>, scalar_prefetch = 0 : i64, scratch_operands = 2 : i64, tpu.core_type = #tpu.core_type<tc>, window_params = [{transform_indices = @transform_0, window_bounds = array<i64: 1, 16, 16, 4>}, {pipeline_mode = #tpu.pipeline_mode<synchronous>, transform_indices = @transform_1, window_bounds = array<i64: 1, 1, 4>}, {pipeline_mode = #tpu.pipeline_mode<synchronous>, transform_indices = @transform_2, window_bounds = array<i64: 1, 1, 4>}, {pipeline_mode = #tpu.pipeline_mode<synchronous>, transform_indices = @transform_3, window_bounds = array<i64: 4, 36>}, {pipeline_mode = #tpu.pipeline_mode<synchronous>, transform_indices = @transform_4, window_bounds = array<i64: 4, 256>}, {transform_indices = @transform_5, window_bounds = array<i64: 1, 4, 256>}]} {
    %c0 = arith.constant 0 : index
    %c0_0 = arith.constant 0 : index
    %c0_1 = arith.constant 0 : index
    %c0_2 = arith.constant 0 : index
    %0 = vector.load %arg1[%c0, %c0_0, %c0_1, %c0_2] : memref<1x16x16x4xf32, #tpu.memory_space<vmem>>, vector<1x16x16x4xf32>
    %1 = vector.shape_cast %0 : vector<1x16x16x4xf32> to vector<16x16x4xf32>
    %c0_3 = arith.constant 0 : index
    %c0_4 = arith.constant 0 : index
    %c0_5 = arith.constant 0 : index
    %2 = vector.load %arg2[%c0_3, %c0_4, %c0_5] : memref<1x1x4xf32, #tpu.memory_space<vmem>>, vector<1x1x4xf32>
    %3 = vector.broadcast %2 : vector<1x1x4xf32> to vector<16x16x4xf32>
    %4 = arith.mulf %1, %3 : vector<16x16x4xf32>
    %c0_6 = arith.constant 0 : index
    %c0_7 = arith.constant 0 : index
    %c0_8 = arith.constant 0 : index
    %5 = vector.load %arg3[%c0_6, %c0_7, %c0_8] : memref<1x1x4xf32, #tpu.memory_space<vmem>>, vector<1x1x4xf32>
    %6 = vector.broadcast %5 : vector<1x1x4xf32> to vector<16x16x4xf32>
    %7 = arith.addf %4, %6 : vector<16x16x4xf32>
    %cst = arith.constant 0.000000e+00 : f32
    %8 = vector.broadcast %cst : f32 to vector<16x16x4xf32>
    %9 = arith.maximumf %7, %8 : vector<16x16x4xf32>
    %cst_9 = arith.constant 0.000000e+00 : f32
    %10 = vector.broadcast %cst_9 : f32 to vector<18x18x4xf32>
    %c0_10 = arith.constant 0 : index
    %c0_11 = arith.constant 0 : index
    %c0_12 = arith.constant 0 : index
    %11 = vector.load %arg7[%c0_10, %c0_11, %c0_12] : memref<18x18x4xf32, #tpu.memory_space<vmem>>, vector<18x18x4xf32>
    tpu.vector_store %arg7[%c0_10, %c0_11, %c0_12], %10 {strides = array<i32>} : memref<18x18x4xf32, #tpu.memory_space<vmem>>, vector<18x18x4xf32>,
    %c1 = arith.constant 1 : index
    %c1_13 = arith.constant 1 : index
    %c0_14 = arith.constant 0 : index
    %12 = vector.load %arg7[%c1, %c1_13, %c0_14] : memref<18x18x4xf32, #tpu.memory_space<vmem>>, vector<16x16x4xf32>
    tpu.vector_store %arg7[%c1, %c1_13, %c0_14], %9 {strides = array<i32>} : memref<18x18x4xf32, #tpu.memory_space<vmem>>, vector<16x16x4xf32>,
    %c0_15 = arith.constant 0 : index
    %c0_16 = arith.constant 0 : index
    %c0_17 = arith.constant 0 : index
    %13 = vector.load %arg7[%c0_15, %c0_16, %c0_17] : memref<18x18x4xf32, #tpu.memory_space<vmem>>, vector<16x16x4xf32>
    %14 = vector.shape_cast %13 : vector<16x16x4xf32> to vector<256x4xf32>
    %c0_18 = arith.constant 0 : index
    %c0_19 = arith.constant 0 : index
    %15 = vector.load %arg8[%c0_18, %c0_19] : memref<256x36xf32, #tpu.memory_space<vmem>>, vector<256x4xf32>
    tpu.vector_store %arg8[%c0_18, %c0_19], %14 {strides = array<i32>} : memref<256x36xf32, #tpu.memory_space<vmem>>, vector<256x4xf32>,
    %c0_20 = arith.constant 0 : index
    %c1_21 = arith.constant 1 : index
    %c0_22 = arith.constant 0 : index
    %16 = vector.load %arg7[%c0_20, %c1_21, %c0_22] : memref<18x18x4xf32, #tpu.memory_space<vmem>>, vector<16x16x4xf32>
    %17 = vector.shape_cast %16 : vector<16x16x4xf32> to vector<256x4xf32>
    %c0_23 = arith.constant 0 : index
    %c4 = arith.constant 4 : index
    %18 = vector.load %arg8[%c0_23, %c4] : memref<256x36xf32, #tpu.memory_space<vmem>>, vector<256x4xf32>
    tpu.vector_store %arg8[%c0_23, %c4], %17 {strides = array<i32>} : memref<256x36xf32, #tpu.memory_space<vmem>>, vector<256x4xf32>,
    %c0_24 = arith.constant 0 : index
    %c2 = arith.constant 2 : index
    %c0_25 = arith.constant 0 : index
    %19 = vector.load %arg7[%c0_24, %c2, %c0_25] : memref<18x18x4xf32, #tpu.memory_space<vmem>>, vector<16x16x4xf32>
    %20 = vector.shape_cast %19 : vector<16x16x4xf32> to vector<256x4xf32>
    %c0_26 = arith.constant 0 : index
    %c8 = arith.constant 8 : index
    %21 = vector.load %arg8[%c0_26, %c8] : memref<256x36xf32, #tpu.memory_space<vmem>>, vector<256x4xf32>
    tpu.vector_store %arg8[%c0_26, %c8], %20 {strides = array<i32>} : memref<256x36xf32, #tpu.memory_space<vmem>>, vector<256x4xf32>,
    %c1_27 = arith.constant 1 : index
    %c0_28 = arith.constant 0 : index
    %c0_29 = arith.constant 0 : index
    %22 = vector.load %arg7[%c1_27, %c0_28, %c0_29] : memref<18x18x4xf32, #tpu.memory_space<vmem>>, vector<16x16x4xf32>
    %23 = vector.shape_cast %22 : vector<16x16x4xf32> to vector<256x4xf32>
    %c0_30 = arith.constant 0 : index
    %c12 = arith.constant 12 : index
    %24 = vector.load %arg8[%c0_30, %c12] : memref<256x36xf32, #tpu.memory_space<vmem>>, vector<256x4xf32>
    tpu.vector_store %arg8[%c0_30, %c12], %23 {strides = array<i32>} : memref<256x36xf32, #tpu.memory_space<vmem>>, vector<256x4xf32>,
    %c1_31 = arith.constant 1 : index
    %c1_32 = arith.constant 1 : index
    %c0_33 = arith.constant 0 : index
    %25 = vector.load %arg7[%c1_31, %c1_32, %c0_33] : memref<18x18x4xf32, #tpu.memory_space<vmem>>, vector<16x16x4xf32>
    %26 = vector.shape_cast %25 : vector<16x16x4xf32> to vector<256x4xf32>
    %c0_34 = arith.constant 0 : index
    %c16 = arith.constant 16 : index
    %27 = vector.load %arg8[%c0_34, %c16] : memref<256x36xf32, #tpu.memory_space<vmem>>, vector<256x4xf32>
    tpu.vector_store %arg8[%c0_34, %c16], %26 {strides = array<i32>} : memref<256x36xf32, #tpu.memory_space<vmem>>, vector<256x4xf32>,
    %c1_35 = arith.constant 1 : index
    %c2_36 = arith.constant 2 : index
    %c0_37 = arith.constant 0 : index
    %28 = vector.load %arg7[%c1_35, %c2_36, %c0_37] : memref<18x18x4xf32, #tpu.memory_space<vmem>>, vector<16x16x4xf32>
    %29 = vector.shape_cast %28 : vector<16x16x4xf32> to vector<256x4xf32>
    %c0_38 = arith.constant 0 : index
    %c20 = arith.constant 20 : index
    %30 = vector.load %arg8[%c0_38, %c20] : memref<256x36xf32, #tpu.memory_space<vmem>>, vector<256x4xf32>
    tpu.vector_store %arg8[%c0_38, %c20], %29 {strides = array<i32>} : memref<256x36xf32, #tpu.memory_space<vmem>>, vector<256x4xf32>,
    %c2_39 = arith.constant 2 : index
    %c0_40 = arith.constant 0 : index
    %c0_41 = arith.constant 0 : index
    %31 = vector.load %arg7[%c2_39, %c0_40, %c0_41] : memref<18x18x4xf32, #tpu.memory_space<vmem>>, vector<16x16x4xf32>
    %32 = vector.shape_cast %31 : vector<16x16x4xf32> to vector<256x4xf32>
    %c0_42 = arith.constant 0 : index
    %c24 = arith.constant 24 : index
    %33 = vector.load %arg8[%c0_42, %c24] : memref<256x36xf32, #tpu.memory_space<vmem>>, vector<256x4xf32>
    tpu.vector_store %arg8[%c0_42, %c24], %32 {strides = array<i32>} : memref<256x36xf32, #tpu.memory_space<vmem>>, vector<256x4xf32>,
    %c2_43 = arith.constant 2 : index
    %c1_44 = arith.constant 1 : index
    %c0_45 = arith.constant 0 : index
    %34 = vector.load %arg7[%c2_43, %c1_44, %c0_45] : memref<18x18x4xf32, #tpu.memory_space<vmem>>, vector<16x16x4xf32>
    %35 = vector.shape_cast %34 : vector<16x16x4xf32> to vector<256x4xf32>
    %c0_46 = arith.constant 0 : index
    %c28 = arith.constant 28 : index
    %36 = vector.load %arg8[%c0_46, %c28] : memref<256x36xf32, #tpu.memory_space<vmem>>, vector<256x4xf32>
    tpu.vector_store %arg8[%c0_46, %c28], %35 {strides = array<i32>} : memref<256x36xf32, #tpu.memory_space<vmem>>, vector<256x4xf32>,
    %c2_47 = arith.constant 2 : index
    %c2_48 = arith.constant 2 : index
    %c0_49 = arith.constant 0 : index
    %37 = vector.load %arg7[%c2_47, %c2_48, %c0_49] : memref<18x18x4xf32, #tpu.memory_space<vmem>>, vector<16x16x4xf32>
    %38 = vector.shape_cast %37 : vector<16x16x4xf32> to vector<256x4xf32>
    %c0_50 = arith.constant 0 : index
    %c32 = arith.constant 32 : index
    %39 = vector.load %arg8[%c0_50, %c32] : memref<256x36xf32, #tpu.memory_space<vmem>>, vector<256x4xf32>
    tpu.vector_store %arg8[%c0_50, %c32], %38 {strides = array<i32>} : memref<256x36xf32, #tpu.memory_space<vmem>>, vector<256x4xf32>,
    %c0_51 = arith.constant 0 : index
    %c0_52 = arith.constant 0 : index
    %40 = vector.load %arg4[%c0_51, %c0_52] : memref<4x36xf32, #tpu.memory_space<vmem>>, vector<4x36xf32>
    %c0_53 = arith.constant 0 : index
    %c0_54 = arith.constant 0 : index
    %41 = vector.load %arg8[%c0_53, %c0_54] : memref<256x36xf32, #tpu.memory_space<vmem>>, vector<256x36xf32>
    %cst_55 = arith.constant dense<0.000000e+00> : vector<4x256xf32>
    %42 = tpu.matmul %40, %41, %cst_55 {dimension_numbers = #tpu.dot_dimension_numbers<[1], [1], [0], [0], [0, 0, 1, 0], [], []>} : vector<4x36xf32>, vector<256x36xf32>, vector<4x256xf32> -> vector<4x256xf32>
    %c0_56 = arith.constant 0 : index
    %c0_57 = arith.constant 0 : index
    %43 = vector.load %arg5[%c0_56, %c0_57] : memref<4x256xf32, #tpu.memory_space<vmem>>, vector<4x256xf32>
    %44 = arith.addf %42, %43 : vector<4x256xf32>
    %c0_58 = arith.constant 0 : index
    %c0_59 = arith.constant 0 : index
    %c0_60 = arith.constant 0 : index
    %45 = vector.load %arg6[%c0_58, %c0_59, %c0_60] : memref<1x4x256xf32, #tpu.memory_space<vmem>>, vector<1x4x256xf32>
    %46 = vector.shape_cast %45 : vector<1x4x256xf32> to vector<4x256xf32>
    %47 = vector.shape_cast %44 : vector<4x256xf32> to vector<1x4x256xf32>
    tpu.vector_store %arg6[%c0_58, %c0_59, %c0_60], %47 {strides = array<i32>} : memref<1x4x256xf32, #tpu.memory_space<vmem>>, vector<1x4x256xf32>,
    return
  }
  func.func @transform_0(%arg0: i32) -> (i32, i32, i32, i32) {
    %c0_i32 = arith.constant 0 : i32
    %c0_i32_0 = arith.constant 0 : i32
    %c0_i32_1 = arith.constant 0 : i32
    %c0_i32_2 = arith.constant 0 : i32
    return %arg0, %c0_i32, %c0_i32_0, %c0_i32_1 : i32, i32, i32, i32
  }
  func.func @transform_1(%arg0: i32) -> (i32, i32, i32) {
    %c0_i32 = arith.constant 0 : i32
    %c0_i32_0 = arith.constant 0 : i32
    %c0_i32_1 = arith.constant 0 : i32
    %c0_i32_2 = arith.constant 0 : i32
    return %c0_i32, %c0_i32_0, %c0_i32_1 : i32, i32, i32
  }
  func.func @transform_2(%arg0: i32) -> (i32, i32, i32) {
    %c0_i32 = arith.constant 0 : i32
    %c0_i32_0 = arith.constant 0 : i32
    %c0_i32_1 = arith.constant 0 : i32
    %c0_i32_2 = arith.constant 0 : i32
    return %c0_i32, %c0_i32_0, %c0_i32_1 : i32, i32, i32
  }
  func.func @transform_3(%arg0: i32) -> (i32, i32) {
    %c0_i32 = arith.constant 0 : i32
    %c0_i32_0 = arith.constant 0 : i32
    %c0_i32_1 = arith.constant 0 : i32
    return %c0_i32, %c0_i32_0 : i32, i32
  }
  func.func @transform_4(%arg0: i32) -> (i32, i32) {
    %c0_i32 = arith.constant 0 : i32
    %c0_i32_0 = arith.constant 0 : i32
    %c0_i32_1 = arith.constant 0 : i32
    return %c0_i32, %c0_i32_0 : i32, i32
  }
  func.func @transform_5(%arg0: i32) -> (i32, i32, i32) {
    %c0_i32 = arith.constant 0 : i32
    %c0_i32_0 = arith.constant 0 : i32
    %c0_i32_1 = arith.constant 0 : i32
    return %arg0, %c0_i32, %c0_i32_0 : i32, i32, i32
  }
}

</mosaic_0001>

<bundles_post_ra>
// kernel: tpu_custom_call.1
= control target key start
LH: loop header
LB: loop body
LE: loop exit
PB: predicated region body
PF: predicated region fallthrough
CT: control target
= control target key end

     0   :  { %10 = vsyncpa [#allocation5], 0  ;;  %s3845_s0 = inlined_call_operand.vmem [shape: f32[2,16,16,4], index: 0, kind: input, shape index: {}]   ;;  %s3846_s1 = inlined_call_operand.vmem [shape: f32[1,1,4], index: 1, kind: input, shape index: {}]   ;;  %s3847_s2 = inlined_call_operand.vmem [shape: f32[1,1,4], index: 2, kind: input, shape index: {}]   ;;  %s3848_s3 = inlined_call_operand.vmem [shape: f32[4,36], index: 3, kind: input, shape index: {}]   ;;  %s3849_s4 = inlined_call_operand.vmem [shape: f32[4,256], index: 4, kind: input, shape index: {}]   ;;  %s3850_s5 = inlined_call_operand.hbm [shape: f32[2,4,256], index: 5, kind: output, shape index: {}]  }
   0x1   :  { %12 = vsyncpa [#allocation5 + $0x1], 0  ;;  %s2584_s18 = smov 0   ;;  %s2586_s19 = smov 0  }
   0x2   :  { %s2588_s20 = smov 0   ;;  %s2590_s21 = smov 0  }
   0x3 LB: > { %s2605_s22 = sadd.s32 4294967295, %s2542_s21   ;;  %s2350_s23 = sadd.s32 4294967294, %s2542_s21   ;;  %s2542_s21 = sphi %s2590_s21, %s3856_s21   ;;  %s2538_s20 = sphi %s2588_s20, %s3855_s20   ;;  %s2534_s19 = sphi %s2586_s19, %s3854_s19   ;;  %s2530_s18 = sphi %s2584_s18, %s3853_s18  }
   0x4   : > { %s2609_s24 = sadd.s32 1, %s2542_s21   ;;  %s135_s25 = sadd.s32 1, %s2538_s20 }
   0x5   : > { %s132_s26 = ssub.s32 %s2542_s21, %s2609_s24  ;;  %p145_p0 = scmp.ne.s32.totalorder %s2538_s20, %s2534_s19 }
   0x6   : > { %p133_p1 = scmp.eq.s32.totalorder %s132_s26, 0  ;;  %p146_p2 = scmp.eq.s32.totalorder %s2605_s22, 1 }
   0x7   : > { %p151_p3 = scmp.ne.s32.totalorder %s2534_s19, %s2530_s18  ;;  %p152_p4 = scmp.eq.s32.totalorder %s2350_s23, 1 }
   0x8   : > { %s2620_s27 = scalar_select %p133_p1, %s2538_s20, %s135_s25  }
   0x9   : > { %p2622_p5 = por %p146_p2, %p145_p0  ;;  %p2626_p6 = por %p152_p4, %p151_p3 }
   0xa   : > { %p2353_p7 = scmp.ge.s32.totalorder %s2542_s21, 1  ;;  %p190_p8 = scmp.lt.s32.totalorder %s2542_s21, 3 }
   0xc   : > { %p191_p9 = pnand %p2353_p7, %p190_p8 }
   0xd   : > { %p218_p10 = scmp.lt.s32.totalorder (!%p191_p9), %s2605_s22, 1  ;;  %s2545_s14 = smov (!%p191_p9), 4  }
   0xe   : > { %194 = sbr.rel (%p191_p9) target bundleno = 901 (0x385), region = 40  ;;  %s2546_s15 = smov (!%p191_p9), 8  }
   0xf   : > { %s2547_s16 = smov (!%p191_p9), 12   ;;  %s2548_s17 = smov (!%p191_p9), 16  }
  0x10   : > { %s2549_s23 = smov (!%p191_p9), 20   ;;  %s2550_s25 = smov (!%p191_p9), 24  }
  0x11   : > { %s2551_s26 = smov (!%p191_p9), 28   ;;  %s215_s8 = sand.u32 (!%p191_p9), 1, %s2534_s19  }
  0x12   : > { %s2398_s12 = sshll.u32 (!%p191_p9), %s2605_s22, 7 }
  0x13   : > { %vm365_vm0 = vcmask 31744   ;;  %v2544_v0 = vmov 0.0   ;;  %vm368_vm1 = vcmask 25600   ;;  %s219_s30 = scalar_select %p218_p10, %s2605_s22, 1  ;;  %v2693_v1 = vld [vmem:[%s3846_s1] ss:$0 sm:$0xff] }
  0x14   : > { %366 = vst.msk [vmem:[#allocation2] sm:$0xff] %vm365_vm0, %v2544_v0  ;;  %367 = vst.msk [vmem:[#allocation2 + $0x8] sm:$0xff] %vm365_vm0, %v2544_v0  ;;  %v2703_v2 = vld [vmem:[%s3847_s2] ss:$0 sm:$0xff]  ;;  %vm678_vm2 = vcmask 64544   ;;  %vm871_vm3 = vcmask 97344  }
  0x15   : > { %370 = vst.msk [vmem:[#allocation2 + $0x18] sm:$0xff] %vm365_vm0, %v2544_v0  ;;  %371 = vst.msk [vmem:[#allocation2 + $0x20] sm:$0xff] %vm365_vm0, %v2544_v0  ;;  %s2397_s6 = sshll.u32 %s219_s30, 8  ;;  %s2552_s30 = smov 32   ;;  %vm1064_vm4 = vcmask 130144   ;;  %vm1257_vm5 = vcmask 162944  }
  0x16   : > { %373 = vst.msk [vmem:[#allocation2 + $0x30] sm:$0xff] %vm365_vm0, %v2544_v0  ;;  %374 = vst.msk [vmem:[#allocation2 + $0x38] sm:$0xff] %vm365_vm0, %v2544_v0  ;;  %s2698_s11 = scalar_lea.vmem %s3845_s0, %s2397_s6  ;;  %vm1450_vm6 = vcmask 195744   ;;  %vm1644_vm7 = vcmask 228544   ;;  %vm1837_vm8 = vcmask 261344   ;;  %vm2030_vm9 = vcmask 294144  }
  0x17   : > { %376 = vst.msk [vmem:[#allocation2 + $0x48] sm:$0xff] %vm365_vm0, %v2544_v0  ;;  %377 = vst.msk [vmem:[#allocation2 + $0x50] sm:$0xff] %vm365_vm0, %v2544_v0  ;;  %v223_v3 = vld [vmem:[%s2698_s11] sm:$0xff]  ;;  %v224_v4 = vld [vmem:[%s2698_s11 + $0x8] sm:$0xff]  ;;  %vm2100_vm10 = vcmask 293888  }
  0x18   : > { %379 = vst.msk [vmem:[#allocation2 + $0x60] sm:$0xff] %vm365_vm0, %v2544_v0  ;;  %380 = vst.msk [vmem:[#allocation2 + $0x68] sm:$0xff] %vm365_vm0, %v2544_v0  ;;  %v225_v5 = vld [vmem:[%s2698_s11 + $0x10] sm:$0xff]  ;;  %v262_v6 = vmul.f32 %v2693_v1, %v223_v3  ;;  %v263_v7 = vmul.f32 %v2693_v1, %v224_v4  ;;  %v226_v9 = vld [vmem:[%s2698_s11 + $0x18] sm:$0xff] }
  0x19   : > { %382 = vst.msk [vmem:[#allocation2 + $0x78] sm:$0xff] %vm365_vm0, %v2544_v0  ;;  %383 = vst.msk [vmem:[#allocation2 + $0x80] sm:$0xff] %vm365_vm0, %v2544_v0  ;;  %v264_v8 = vmul.f32 %v2693_v1, %v225_v5  ;;  %v227_v10 = vld [vmem:[%s2698_s11 + $0x20] sm:$0xff]  ;;  %v228_v11 = vld [vmem:[%s2698_s11 + $0x28] sm:$0xff]  ;;  %v265_v13 = vmul.f32 %v2693_v1, %v226_v9 }
  0x1a   : > { %385 = vst.msk [vmem:[#allocation2 + $0x90] sm:$0xff] %vm365_vm0, %v2544_v0  ;;  %386 = vst.msk [vmem:[#allocation2 + $0x98] sm:$0xff] %vm365_vm0, %v2544_v0  ;;  %v266_v14 = vmul.f32 %v2693_v1, %v227_v10  ;;  %v267_v15 = vmul.f32 %v2693_v1, %v228_v11  ;;  %v229_v16 = vld [vmem:[%s2698_s11 + $0x30] sm:$0xff]  ;;  %v230_v17 = vld [vmem:[%s2698_s11 + $0x38] sm:$0xff]  ;;  %v301_v18 = vadd.f32 %v2703_v2, %v262_v6 }
  0x1b   : > { %388 = vst.msk [vmem:[#allocation2 + $0xa8] sm:$0xff] %vm365_vm0, %v2544_v0  ;;  %389 = vst.msk [vmem:[#allocation2 + $0xb0] sm:$0xff] %vm365_vm0, %v2544_v0  ;;  %v518_v12 = vld [vmem:[#allocation2 + $0x1] sm:$0xff]  ;;  %v302_v20 = vadd.f32 %v2703_v2, %v263_v7  ;;  %v303_v21 = vadd.f32 %v2703_v2, %v264_v8  ;;  %v268_v22 = vmul.f32 %v2693_v1, %v229_v16  ;;  %v233_v29 = vld [vmem:[%s2698_s11 + $0x50] sm:$0xff] }
  0x1c   : > { %391 = vst.msk [vmem:[#allocation2 + $0xc0] sm:$0xff] %vm365_vm0, %v2544_v0  ;;  %392 = vst.msk [vmem:[#allocation2 + $0xc8] sm:$0xff] %vm365_vm0, %v2544_v0  ;;  %582 = vrot.lane.b32.xlu0 %v518_v12, %s2545_s14  ;;  %v304_v23 = vadd.f32 %v2703_v2, %v265_v13  ;;  %v305_v24 = vadd.f32 %v2703_v2, %v266_v14  ;;  %v306_v25 = vadd.f32 %v2703_v2, %v267_v15  ;;  %v231_v27 = vld [vmem:[%s2698_s11 + $0x40] sm:$0xff]  ;;  %v232_v28 = vld [vmem:[%s2698_s11 + $0x48] sm:$0xff] }
  0x1d   : > { %394 = vst.msk [vmem:[#allocation2 + $0xd8] sm:$0xff] %vm365_vm0, %v2544_v0  ;;  %395 = vst.msk [vmem:[#allocation2 + $0xe0] sm:$0xff] %vm365_vm0, %v2544_v0  ;;  %v269_v26 = vmul.f32 %v2693_v1, %v230_v17  ;;  %v333_v30 = vmax.f32 %v301_v18, 0.0  ;;  %v334_v31 = vmax.f32 %v302_v20, 0.0  ;;  %v335_v32 = vmax.f32 %v303_v21, 0.0  ;;  %v234_v34 = vld [vmem:[%s2698_s11 + $0x58] sm:$0xff] }
  0x1e   : > { %397 = vst.msk [vmem:[#allocation2 + $0xf0] sm:$0xff] %vm365_vm0, %v2544_v0  ;;  %398 = vst.msk [vmem:[#allocation2 + $0xf8] sm:$0xff] %vm365_vm0, %v2544_v0  ;;  %v307_v33 = vadd.f32 %v2703_v2, %v268_v22  ;;  %v235_v35 = vld [vmem:[%s2698_s11 + $0x60] sm:$0xff]  ;;  %v236_v36 = vld [vmem:[%s2698_s11 + $0x68] sm:$0xff]  ;;  %v336_v37 = vmax.f32 %v304_v23, 0.0  ;;  %v337_v38 = vmax.f32 %v305_v24, 0.0  ;;  %v270_v43 = vmul.f32 %v2693_v1, %v231_v27 }
  0x1f   : > { %400 = vst.msk [vmem:[#allocation2 + $0x108] sm:$0xff] %vm365_vm0, %v2544_v0  ;;  %401 = vst.msk [vmem:[#allocation2 + $0x110] sm:$0xff] %vm365_vm0, %v2544_v0  ;;  %v338_v39 = vmax.f32 %v306_v25, 0.0  ;;  %v308_v40 = vadd.f32 %v2703_v2, %v269_v26  ;;  %v237_v41 = vld [vmem:[%s2698_s11 + $0x70] sm:$0xff]  ;;  %v271_v44 = vmul.f32 %v2693_v1, %v232_v28  ;;  %v272_v45 = vmul.f32 %v2693_v1, %v233_v29  ;;  %v238_v46 = vld [vmem:[%s2698_s11 + $0x78] sm:$0xff] }
  0x20   : > { %403 = vst.msk [vmem:[#allocation2 + $0x120] sm:$0xff] %vm365_vm0, %v2544_v0  ;;  %404 = vst.msk [vmem:[#allocation2 + $0x128] sm:$0xff] %vm365_vm0, %v2544_v0  ;;  %v339_v42 = vmax.f32 %v307_v33, 0.0  ;;  %v273_v48 = vmul.f32 %v2693_v1, %v234_v34  ;;  %v274_v49 = vmul.f32 %v2693_v1, %v235_v35  ;;  %v275_v50 = vmul.f32 %v2693_v1, %v236_v36  ;;  %v239_v55 = vld [vmem:[%s2698_s11 + $0x80] sm:$0xff]  ;;  %v240_v56 = vld [vmem:[%s2698_s11 + $0x88] sm:$0xff] }
  0x21   : > { %406 = vst.msk [vmem:[#allocation2 + $0x138] sm:$0xff] %vm365_vm0, %v2544_v0  ;;  %407 = vst.msk [vmem:[#allocation2 + $0x140] sm:$0xff] %vm365_vm0, %v2544_v0  ;;  %v340_v47 = vmax.f32 %v308_v40, 0.0  ;;  %v309_v51 = vadd.f32 %v2703_v2, %v270_v43  ;;  %v310_v52 = vadd.f32 %v2703_v2, %v271_v44  ;;  %v311_v53 = vadd.f32 %v2703_v2, %v272_v45  ;;  %v241_v61 = vld [vmem:[%s2698_s11 + $0x90] sm:$0xff]  ;;  %v242_v62 = vld [vmem:[%s2698_s11 + $0x98] sm:$0xff] }
  0x22   : > { %409 = vst.msk [vmem:[#allocation2 + $0x150] sm:$0xff] %vm365_vm0, %v2544_v0  ;;  %410 = vst.msk [vmem:[#allocation2 + $0x158] sm:$0xff] %vm365_vm0, %v2544_v0  ;;  %v276_v54 = vmul.f32 %v2693_v1, %v237_v41  ;;  %v312_v57 = vadd.f32 %v2703_v2, %v273_v48  ;;  %v313_v58 = vadd.f32 %v2703_v2, %v274_v49  ;;  %v243_v63 = vld [vmem:[%s2698_s11 + $0xa0] sm:$0xff]  ;;  %v244_v6 = vld [vmem:[%s2698_s11 + $0xa8] sm:$0xff] }
  0x23   : > { %412 = vst.msk [vmem:[#allocation2 + $0x168] sm:$0xff] %vm365_vm0, %v2544_v0  ;;  %413 = vst.msk [vmem:[#allocation2 + $0x170] sm:$0xff] %vm365_vm0, %v2544_v0  ;;  %v314_v59 = vadd.f32 %v2703_v2, %v275_v50  ;;  %v277_v60 = vmul.f32 %v2693_v1, %v238_v46  ;;  %v342_v3 = vmax.f32 %v310_v52, 0.0  ;;  %v343_v4 = vmax.f32 %v311_v53, 0.0  ;;  %v454_v7 = vld [vmem:[#allocation2] sm:$0xff]  ;;  %v455_v8 = vld [vmem:[#allocation2 + $0x8] sm:$0xff] }
  0x24   : > { %415 = vst.msk [vmem:[#allocation2 + $0x180] sm:$0xff] %vm365_vm0, %v2544_v0  ;;  %416 = vst.msk [vmem:[#allocation2 + $0x188] sm:$0xff] %vm365_vm0, %v2544_v0  ;;  %v315_v5 = vadd.f32 %v2703_v2, %v276_v54  ;;  %v344_v9 = vmax.f32 %v312_v57, 0.0  ;;  %v345_v10 = vmax.f32 %v313_v58, 0.0  ;;  %v278_v14 = vmul.f32 %v2693_v1, %v239_v55  ;;  %v245_v17 = vld [vmem:[%s2698_s11 + $0xb0] sm:$0xff]  ;;  %v246_v24 = vld [vmem:[%s2698_s11 + $0xb8] sm:$0xff] }
  0x25   : > { %418 = vst.msk [vmem:[#allocation2 + $0x198] sm:$0xff] %vm365_vm0, %v2544_v0  ;;  %419 = vst.msk [vmem:[#allocation2 + $0x1a0] sm:$0xff] %vm365_vm0, %v2544_v0  ;;  %v346_v11 = vmax.f32 %v314_v59, 0.0  ;;  %v316_v12 = vadd.f32 %v2703_v2, %v277_v60  ;;  %v279_v15 = vmul.f32 %v2693_v1, %v240_v56  ;;  %v280_v16 = vmul.f32 %v2693_v1, %v241_v61  ;;  %v247_v28 = vld [vmem:[%s2698_s11 + $0xc0] sm:$0xff]  ;;  %v248_v35 = vld [vmem:[%s2698_s11 + $0xc8] sm:$0xff] }
  0x26   : > { %369 = vst.msk [vmem:[#allocation2 + $0x10] sm:$0x3] %vm368_vm1, %v2544_v0  ;;  %372 = vst.msk [vmem:[#allocation2 + $0x28] sm:$0x3] %vm368_vm1, %v2544_v0  ;;  %v347_v13 = vmax.f32 %v315_v5, 0.0  ;;  %v281_v21 = vmul.f32 %v2693_v1, %v242_v62  ;;  %v282_v22 = vmul.f32 %v2693_v1, %v243_v63  ;;  %v283_v23 = vmul.f32 %v2693_v1, %v244_v6  ;;  %v249_v40 = vld [vmem:[%s2698_s11 + $0xd0] sm:$0xff] }
  0x27   : > { %375 = vst.msk [vmem:[#allocation2 + $0x40] sm:$0x3] %vm368_vm1, %v2544_v0  ;;  %378 = vst.msk [vmem:[#allocation2 + $0x58] sm:$0x3] %vm368_vm1, %v2544_v0  ;;  %v348_v20 = vmax.f32 %v316_v12, 0.0  ;;  %v317_v25 = vadd.f32 %v2703_v2, %v278_v14  ;;  %v318_v26 = vadd.f32 %v2703_v2, %v279_v15  ;;  %v319_v27 = vadd.f32 %v2703_v2, %v280_v16  ;;  %v250_v41 = vld [vmem:[%s2698_s11 + $0xd8] sm:$0xff] }
  0x28   : > { %381 = vst.msk [vmem:[#allocation2 + $0x70] sm:$0x3] %vm368_vm1, %v2544_v0  ;;  %384 = vst.msk [vmem:[#allocation2 + $0x88] sm:$0x3] %vm368_vm1, %v2544_v0  ;;  %v322_v33 = vadd.f32 %v2703_v2, %v283_v23  ;;  %v284_v34 = vmul.f32 %v2693_v1, %v245_v17  ;;  %v286_v49 = vmul.f32 %v2693_v1, %v247_v28 }
  0x29   : > { %387 = vst.msk [vmem:[#allocation2 + $0xa0] sm:$0x3] %vm368_vm1, %v2544_v0  ;;  %390 = vst.msk [vmem:[#allocation2 + $0xb8] sm:$0x3] %vm368_vm1, %v2544_v0  ;;  %v349_v36 = vmax.f32 %v317_v25, 0.0  ;;  %v287_v50 = vmul.f32 %v2693_v1, %v248_v35  ;;  %v288_v56 = vmul.f32 %v2693_v1, %v249_v40  ;;  %v289_v57 = vmul.f32 %v2693_v1, %v250_v41 }
  0x2a   : > { %393 = vst.msk [vmem:[#allocation2 + $0xd0] sm:$0x3] %vm368_vm1, %v2544_v0  ;;  %396 = vst.msk [vmem:[#allocation2 + $0xe8] sm:$0x3] %vm368_vm1, %v2544_v0  ;;  %v354_v45 = vmax.f32 %v322_v33, 0.0  ;;  %v323_v46 = vadd.f32 %v2703_v2, %v284_v34  ;;  %v325_v60 = vadd.f32 %v2703_v2, %v286_v49 }
  0x2b   : > { %399 = vst.msk [vmem:[#allocation2 + $0x100] sm:$0x3] %vm368_vm1, %v2544_v0  ;;  %402 = vst.msk [vmem:[#allocation2 + $0x118] sm:$0x3] %vm368_vm1, %v2544_v0  ;;  %v326_v61 = vadd.f32 %v2703_v2, %v287_v50  ;;  %v327_v63 = vadd.f32 %v2703_v2, %v288_v56 }
  0x2c   : > { %405 = vst.msk [vmem:[#allocation2 + $0x130] sm:$0x3] %vm368_vm1, %v2544_v0  ;;  %408 = vst.msk [vmem:[#allocation2 + $0x148] sm:$0x3] %vm368_vm1, %v2544_v0  ;;  %v355_v55 = vmax.f32 %v323_v46, 0.0 }
  0x2d   : > { %411 = vst.msk [vmem:[#allocation2 + $0x160] sm:$0x3] %vm368_vm1, %v2544_v0  ;;  %414 = vst.msk [vmem:[#allocation2 + $0x178] sm:$0x3] %vm368_vm1, %v2544_v0  ;;  %v519_v19 = vld [vmem:[#allocation2 + $0x9] sm:$0xff]  ;;  %v358_v5 = vmax.f32 %v326_v61, 0.0 }
  0x2e   : > { %417 = vst.msk [vmem:[#allocation2 + $0x190] sm:$0x3] %vm368_vm1, %v2544_v0  ;;  %420 = vst.msk [vmem:[#allocation2 + $0x1a8] sm:$0x3] %vm368_vm1, %v2544_v0  ;;  %584 = vrot.lane.b32.xlu0 %v519_v19, %s2545_s14  ;;  %v341_v0 = vmax.f32 %v309_v51, 0.0 }
  0x2f   : > { %422 = vst.msk [vmem:[#allocation2 + $0x19] sm:$0xff] %vm365_vm0, %v333_v30  ;;  %423 = vst.msk [vmem:[#allocation2 + $0x21] sm:$0xff] %vm365_vm0, %v334_v31  ;;  %v320_v31 = vadd.f32 %v2703_v2, %v281_v21 }
  0x30   : > { %424 = vst.msk [vmem:[#allocation2 + $0x31] sm:$0xff] %vm365_vm0, %v335_v32  ;;  %425 = vst.msk [vmem:[#allocation2 + $0x39] sm:$0xff] %vm365_vm0, %v336_v37  ;;  %v321_v32 = vadd.f32 %v2703_v2, %v282_v22  ;;  %v350_v37 = vmax.f32 %v318_v26, 0.0 }
  0x31   : > { %426 = vst.msk [vmem:[#allocation2 + $0x49] sm:$0xff] %vm365_vm0, %v337_v38  ;;  %427 = vst.msk [vmem:[#allocation2 + $0x51] sm:$0xff] %vm365_vm0, %v338_v39  ;;  %v351_v38 = vmax.f32 %v319_v27, 0.0  ;;  %v285_v39 = vmul.f32 %v2693_v1, %v246_v24  ;;  %v352_v43 = vmax.f32 %v320_v31, 0.0 }
  0x32   : > { %428 = vst.msk [vmem:[#allocation2 + $0x61] sm:$0xff] %vm365_vm0, %v339_v42  ;;  %429 = vst.msk [vmem:[#allocation2 + $0x69] sm:$0xff] %vm365_vm0, %v340_v47  ;;  %v251_v42 = vld [vmem:[%s2698_s11 + $0xe0] sm:$0xff]  ;;  %v353_v44 = vmax.f32 %v321_v32, 0.0  ;;  %v252_v47 = vld [vmem:[%s2698_s11 + $0xe8] sm:$0xff] }
  0x33   : > { %486 = vst.msk [vmem:[#allocation3] sm:$0xff] %vm365_vm0, %v454_v7  ;;  %487 = vst.msk [vmem:[#allocation3 + $0x8] sm:$0xff] %vm365_vm0, %v455_v8  ;;  %v324_v48 = vadd.f32 %v2703_v2, %v285_v39  ;;  %v290_v58 = vmul.f32 %v2693_v1, %v251_v42  ;;  %v291_v62 = vmul.f32 %v2693_v1, %v252_v47  ;;  %v253_v47 = vld [vmem:[%s2698_s11 + $0xf0] sm:$0xff] }
  0x34   : > { %430 = vst.msk [vmem:[#allocation2 + $0x79] sm:$0xff] %vm365_vm0, %v341_v0  ;;  %431 = vst.msk [vmem:[#allocation2 + $0x81] sm:$0xff] %vm365_vm0, %v342_v3  ;;  %v328_v0 = vadd.f32 %v2703_v2, %v289_v57  ;;  %v292_v49 = vmul.f32 %v2693_v1, %v253_v47 }
  0x35   : > { %432 = vst.msk [vmem:[#allocation2 + $0x91] sm:$0xff] %vm365_vm0, %v343_v4  ;;  %433 = vst.msk [vmem:[#allocation2 + $0x99] sm:$0xff] %vm365_vm0, %v344_v9  ;;  %v356_v59 = vmax.f32 %v324_v48, 0.0  ;;  %v329_v3 = vadd.f32 %v2703_v2, %v290_v58  ;;  %v357_v4 = vmax.f32 %v325_v60, 0.0  ;;  %v330_v6 = vadd.f32 %v2703_v2, %v291_v62  ;;  %v254_v48 = vld [vmem:[%s2698_s11 + $0xf8] sm:$0xff]  ;;  %s2354_s11 = sshll.u32 %s215_s8, 3 }
  0x36   : > { %v520_v18 = vld [vmem:[#allocation2 + $0x19] sm:$0xff]  ;;  %434 = vst.msk [vmem:[#allocation2 + $0xa9] sm:$0xff] %vm365_vm0, %v345_v10  ;;  %435 = vst.msk [vmem:[#allocation2 + $0xb1] sm:$0xff] %vm365_vm0, %v346_v11  ;;  %v521_v29 = vld [vmem:[#allocation2 + $0x21] sm:$0xff]  ;;  %v359_v9 = vmax.f32 %v327_v63, 0.0  ;;  %v360_v10 = vmax.f32 %v328_v0, 0.0  ;;  %v293_v50 = vmul.f32 %v2693_v1, %v254_v48 }
  0x37   : > { %v522_v19 = vld [vmem:[#allocation2 + $0x31] sm:$0xff]  ;;  %586 = vrot.lane.b32.xlu1 %v520_v18, %s2545_s14  ;;  %436 = vst.msk [vmem:[#allocation2 + $0xc1] sm:$0xff] %vm365_vm0, %v347_v13  ;;  %437 = vst.msk [vmem:[#allocation2 + $0xc9] sm:$0xff] %vm365_vm0, %v348_v20  ;;  %v2814_v52 = vld [vmem:[#allocation2 + $0x20] sm:$0xff]  ;;  %v361_v11 = vmax.f32 %v329_v3, 0.0  ;;  %v362_v12 = vmax.f32 %v330_v6, 0.0 }
  0x38   : > { %590 = vrot.lane.b32.xlu0 %v522_v19, %s2545_s14  ;;  %v524_v30 = vld [vmem:[#allocation2 + $0x49] sm:$0xff]  ;;  %438 = vst.msk [vmem:[#allocation2 + $0xd9] sm:$0xff] %vm365_vm0, %v349_v36  ;;  %439 = vst.msk [vmem:[#allocation2 + $0xe1] sm:$0xff] %vm365_vm0, %v350_v37  ;;  %v2812_v51 = vld [vmem:[#allocation2 + $0x18] sm:$0xff]  ;;  %v332_v56 = vadd.f32 %v2703_v2, %v293_v50  ;;  %s217_s13 = scalar_lea.vmem [#allocation4], %s2354_s11 }
  0x39   : > { %440 = vst.msk [vmem:[#allocation2 + $0xf1] sm:$0xff] %vm365_vm0, %v351_v38  ;;  %v523_v53 = vld [vmem:[#allocation2 + $0x39] sm:$0xff]  ;;  %v526_v54 = vld [vmem:[#allocation2 + $0x61] sm:$0xff]  ;;  %441 = vst.msk [vmem:[#allocation2 + $0xf9] sm:$0xff] %vm365_vm0, %v352_v43 }
  0x3a   : > { %442 = vst.msk [vmem:[#allocation2 + $0x109] sm:$0xff] %vm365_vm0, %v353_v44  ;;  %443 = vst.msk [vmem:[#allocation2 + $0x111] sm:$0xff] %vm365_vm0, %v354_v45  ;;  %v525_v7 = vld [vmem:[#allocation2 + $0x51] sm:$0xff]  ;;  %v527_v15 = vld [vmem:[#allocation2 + $0x69] sm:$0xff] }
  0x3b   : > { %588 = vrot.lane.b32.xlu1 %v521_v29, %s2545_s14  ;;  %488 = vst.msk [vmem:[#allocation3 + $0x10] sm:$0xff] %vm365_vm0, %v2812_v51  ;;  %489 = vst.msk [vmem:[#allocation3 + $0x18] sm:$0xff] %vm365_vm0, %v2814_v52  ;;  %v528_v8 = vld [vmem:[#allocation2 + $0x79] sm:$0xff]  ;;  %v2839_v13 = vld [vmem:[#allocation2 + $0x30] sm:$0xff] }
  0x3c   : > { %594 = vrot.lane.b32.xlu0 %v524_v30, %s2545_s14  ;;  %444 = vst.msk [vmem:[#allocation2 + $0x121] sm:$0xff] %vm365_vm0, %v355_v55  ;;  %445 = vst.msk [vmem:[#allocation2 + $0x129] sm:$0xff] %vm365_vm0, %v356_v59  ;;  %v2841_v14 = vld [vmem:[#allocation2 + $0x38] sm:$0xff]  ;;  %v2855_v17 = vld [vmem:[#allocation2 + $0x48] sm:$0xff]  ;;  %v331_v55 = vadd.f32 %v2703_v2, %v292_v49  ;;  %v364_v59 = vmax.f32 %v332_v56, 0.0 }
  0x3d   : > { %446 = vst.msk [vmem:[#allocation2 + $0x139] sm:$0xff] %vm365_vm0, %v357_v4  ;;  %447 = vst.msk [vmem:[#allocation2 + $0x141] sm:$0xff] %vm365_vm0, %v358_v5  ;;  %v530_v16 = vld [vmem:[#allocation2 + $0x91] sm:$0xff]  ;;  %v529_v19 = vld [vmem:[#allocation2 + $0x81] sm:$0xff] }
  0x3e   : > { %448 = vst.msk [vmem:[#allocation2 + $0x151] sm:$0xff] %vm365_vm0, %v359_v9  ;;  %449 = vst.msk [vmem:[#allocation2 + $0x159] sm:$0xff] %vm365_vm0, %v360_v10  ;;  %v2857_v18 = vld [vmem:[#allocation2 + $0x50] sm:$0xff]  ;;  %v531_v21 = vld [vmem:[#allocation2 + $0x99] sm:$0xff]  ;;  %v363_v1 = vmax.f32 %v331_v55, 0.0 }
  0x3f   : > { %592 = vrot.lane.b32.xlu1 %v523_v53, %s2545_s14  ;;  %450 = vst.msk [vmem:[#allocation2 + $0x169] sm:$0xff] %vm365_vm0, %v361_v11  ;;  %490 = vst.msk [vmem:[#allocation3 + $0x20] sm:$0xff] %vm365_vm0, %v2839_v13  ;;  %v532_v20 = vld [vmem:[#allocation2 + $0xa9] sm:$0xff]  ;;  %v2865_v22 = vld [vmem:[#allocation2 + $0xc1] sm:$0xff] }
  0x40   : > { %598 = vrot.lane.b32.xlu0 %v526_v54, %s2545_s14  ;;  %491 = vst.msk [vmem:[#allocation3 + $0x28] sm:$0xff] %vm365_vm0, %v2841_v14  ;;  %451 = vst.msk [vmem:[#allocation2 + $0x171] sm:$0xff] %vm365_vm0, %v362_v12  ;;  %v2867_v23 = vld [vmem:[#allocation2 + $0x60] sm:$0xff]  ;;  %v2869_v24 = vld [vmem:[#allocation2 + $0x68] sm:$0xff] }
  0x41   : > { %492 = vst.msk [vmem:[#allocation3 + $0x30] sm:$0xff] %vm365_vm0, %v2855_v17  ;;  %493 = vst.msk [vmem:[#allocation3 + $0x38] sm:$0xff] %vm365_vm0, %v2857_v18  ;;  %v2871_v25 = vld [vmem:[#allocation2 + $0x78] sm:$0xff]  ;;  %v2879_v26 = vld [vmem:[#allocation2 + $0x80] sm:$0xff] }
  0x42   : > { %494 = vst.msk [vmem:[#allocation3 + $0x40] sm:$0xff] %vm365_vm0, %v2867_v23  ;;  %495 = vst.msk [vmem:[#allocation3 + $0x48] sm:$0xff] %vm365_vm0, %v2869_v24  ;;  %v2881_v27 = vld [vmem:[#allocation2 + $0x90] sm:$0xff]  ;;  %v2883_v28 = vld [vmem:[#allocation2 + $0x98] sm:$0xff] }
  0x43   : > { %596 = vrot.lane.b32.xlu1 %v525_v7, %s2545_s14  ;;  %496 = vst.msk [vmem:[#allocation3 + $0x50] sm:$0xff] %vm365_vm0, %v2871_v25  ;;  %v2885_v29 = vld [vmem:[#allocation2 + $0xb1] sm:$0xff]  ;;  %497 = vst.msk [vmem:[#allocation3 + $0x58] sm:$0xff] %vm365_vm0, %v2879_v26  ;;  %v2893_v30 = vld [vmem:[#allocation2 + $0xa8] sm:$0xff] }
  0x44   : > { %602 = vrot.lane.b32.xlu0 %v528_v8, %s2545_s14  ;;  %498 = vst.msk [vmem:[#allocation3 + $0x60] sm:$0xff] %vm365_vm0, %v2881_v27  ;;  %499 = vst.msk [vmem:[#allocation3 + $0x68] sm:$0xff] %vm365_vm0, %v2883_v28  ;;  %v2895_v31 = vld [vmem:[#allocation2 + $0xb0] sm:$0xff]  ;;  %v2897_v32 = vld [vmem:[#allocation2 + $0xc0] sm:$0xff] }
  0x45   : > { %500 = vst.msk [vmem:[#allocation3 + $0x70] sm:$0xff] %vm365_vm0, %v2893_v30  ;;  %501 = vst.msk [vmem:[#allocation3 + $0x78] sm:$0xff] %vm365_vm0, %v2895_v31  ;;  %v2908_v33 = vld [vmem:[#allocation2 + $0xc8] sm:$0xff]  ;;  %v2910_v34 = vld [vmem:[#allocation2 + $0xd8] sm:$0xff] }
  0x46   : > { %502 = vst.msk [vmem:[#allocation3 + $0x80] sm:$0xff] %vm365_vm0, %v2897_v32  ;;  %v2912_v35 = vld [vmem:[#allocation2 + $0xe0] sm:$0xff]  ;;  %503 = vst.msk [vmem:[#allocation3 + $0x88] sm:$0xff] %vm365_vm0, %v2908_v33  ;;  %v2922_v37 = vld [vmem:[#allocation2 + $0xf0] sm:$0xff] }
  0x47   : > { %600 = vrot.lane.b32.xlu1 %v527_v15, %s2545_s14  ;;  %v2914_v36 = vld [vmem:[#allocation2 + $0xd9] sm:$0xff]  ;;  %504 = vst.msk [vmem:[#allocation3 + $0x90] sm:$0xff] %vm365_vm0, %v2910_v34  ;;  %505 = vst.msk [vmem:[#allocation3 + $0x98] sm:$0xff] %vm365_vm0, %v2912_v35  ;;  %v2934_v39 = vld [vmem:[#allocation2 + $0x108] sm:$0xff] }
  0x48   : > { %606 = vrot.lane.b32.xlu0 %v530_v16, %s2545_s14  ;;  %v2924_v38 = vld [vmem:[#allocation2 + $0xf8] sm:$0xff]  ;;  %506 = vst.msk [vmem:[#allocation3 + $0xa0] sm:$0xff] %vm365_vm0, %v2922_v37  ;;  %v2936_v40 = vld [vmem:[#allocation2 + $0x110] sm:$0xff]  ;;  %508 = vst.msk [vmem:[#allocation3 + $0xb0] sm:$0xff] %vm365_vm0, %v2934_v39 }
  0x49   : > { %507 = vst.msk [vmem:[#allocation3 + $0xa8] sm:$0xff] %vm365_vm0, %v2924_v38  ;;  %v2938_v41 = vld [vmem:[#allocation2 + $0xc9] sm:$0xff]  ;;  %v538_v42 = vld [vmem:[#allocation2 + $0xf1] sm:$0xff]  ;;  %509 = vst.msk [vmem:[#allocation3 + $0xb8] sm:$0xff] %vm365_vm0, %v2936_v40 }
  0x4a   : > { %v2946_v43 = vld [vmem:[#allocation2 + $0xe1] sm:$0xff]  ;;  %v540_v46 = vld [vmem:[#allocation2 + $0x109] sm:$0xff]  ;;  %v2964_v53 = vld [vmem:[#allocation2 + $0x138] sm:$0xff]  ;;  %452 = vst.msk [vmem:[#allocation2 + $0x181] sm:$0xff] %vm365_vm0, %v363_v1 }
  0x4b   : > { %604 = vrot.lane.b32.xlu1 %v529_v19, %s2545_s14  ;;  %v2949_v44 = vld [vmem:[#allocation2 + $0x120] sm:$0xff]  ;;  %v2951_v45 = vld [vmem:[#allocation2 + $0x128] sm:$0xff]  ;;  %512 = vst.msk [vmem:[#allocation3 + $0xd0] sm:$0xff] %vm365_vm0, %v2964_v53  ;;  %v2976_v60 = vld [vmem:[#allocation2 + $0x150] sm:$0xff] }
  0x4c   : > { %610 = vrot.lane.b32.xlu0 %v532_v20, %s2545_s14  ;;  %510 = vst.msk [vmem:[#allocation3 + $0xc0] sm:$0xff] %vm365_vm0, %v2949_v44  ;;  %511 = vst.msk [vmem:[#allocation3 + $0xc8] sm:$0xff] %vm365_vm0, %v2951_v45  ;;  %v2966_v54 = vld [vmem:[#allocation2 + $0x140] sm:$0xff]  ;;  %v2978_v61 = vld [vmem:[#allocation2 + $0x158] sm:$0xff] }
  0x4d   : > { %v539_v57 = vld [vmem:[#allocation2 + $0xf9] sm:$0xff]  ;;  %v542_v58 = vld [vmem:[#allocation2 + $0x121] sm:$0xff]  ;;  %513 = vst.msk [vmem:[#allocation3 + $0xd8] sm:$0xff] %vm365_vm0, %v2966_v54  ;;  %453 = vst.msk [vmem:[#allocation2 + $0x189] sm:$0xff] %vm365_vm0, %v364_v59 }
  0x4e   : > { %v541_v2 = vld [vmem:[#allocation2 + $0x111] sm:$0xff]  ;;  %v544_v62 = vld [vmem:[#allocation2 + $0x139] sm:$0xff]  ;;  %514 = vst.msk [vmem:[#allocation3 + $0xe0] sm:$0xff] %vm365_vm0, %v2976_v60  ;;  %515 = vst.msk [vmem:[#allocation3 + $0xe8] sm:$0xff] %vm365_vm0, %v2978_v61 }
  0x4f   : > { %608 = vrot.lane.b32.xlu1 %v531_v21, %s2545_s14  ;;  %v2988_v63 = vld [vmem:[#allocation2 + $0x168] sm:$0xff]  ;;  %v2990_v0 = vld [vmem:[#allocation2 + $0x170] sm:$0xff]  ;;  %v3006_v7 = vld [vmem:[#allocation2 + $0x159] sm:$0xff] }
  0x50   : > { %614 = vrot.lane.b32.xlu0 %v2865_v22, %s2545_s14  ;;  %v543_v3 = vld [vmem:[#allocation2 + $0x129] sm:$0xff]  ;;  %v2992_v4 = vld [vmem:[#allocation2 + $0x151] sm:$0xff]  ;;  %516 = vst.msk [vmem:[#allocation3 + $0xf0] sm:$0xff] %vm365_vm0, %v2988_v63  ;;  %517 = vst.msk [vmem:[#allocation3 + $0xf8] sm:$0xff] %vm365_vm0, %v2990_v0 }
  0x51   : > { %v545_v5 = vld [vmem:[#allocation2 + $0x141] sm:$0xff]  ;;  %v3001_v6 = vld [vmem:[#allocation2 + $0x169] sm:$0xff]  ;;  %v3011_v9 = vld [vmem:[#allocation2 + $0x171] sm:$0xff] }
  0x52   : > { %v711_v8 = vld [vmem:[#allocation2 + $0x2] sm:$0xff]  ;;  %v713_v10 = vld [vmem:[#allocation2 + $0x1a] sm:$0xff]  ;;  %v712_v11 = vld [vmem:[#allocation2 + $0xa] sm:$0xff] }
  0x53   : > { %612 = vrot.lane.b32.xlu1 %v2885_v29, %s2545_s14  ;;  %v715_v12 = vld [vmem:[#allocation2 + $0x32] sm:$0xff]  ;;  %v714_v15 = vld [vmem:[#allocation2 + $0x22] sm:$0xff]  ;;  %v717_v16 = vld [vmem:[#allocation2 + $0x4a] sm:$0xff] }
  0x54   : > { %618 = vrot.lane.b32.xlu0 %v2914_v36, %s2545_s14  ;;  %v716_v19 = vld [vmem:[#allocation2 + $0x3a] sm:$0xff]  ;;  %v719_v20 = vld [vmem:[#allocation2 + $0x62] sm:$0xff]  ;;  %v718_v21 = vld [vmem:[#allocation2 + $0x52] sm:$0xff] }
  0x55   : > { %v3024_v47 = vld [vmem:[#allocation2 + $0x92] sm:$0xff]  ;;  %v722_v48 = vld [vmem:[#allocation2 + $0x82] sm:$0xff]  ;;  %v3029_v49 = vld [vmem:[#allocation2 + $0xaa] sm:$0xff] }
  0x56   : > { %v3034_v50 = vld [vmem:[#allocation2 + $0x9a] sm:$0xff]  ;;  %v3036_v55 = vld [vmem:[#allocation2 + $0xc2] sm:$0xff]  ;;  %v3042_v56 = vld [vmem:[#allocation2 + $0xb2] sm:$0xff] }
  0x57   : > { %616 = vrot.lane.b32.xlu1 %v2938_v41, %s2545_s14  ;;  %v731_v1 = vld [vmem:[#allocation2 + $0xf2] sm:$0xff]  ;;  %v3055_v59 = vld [vmem:[#allocation2 + $0xe2] sm:$0xff] }
  0x58   : > { %622 = vrot.lane.b32.xlu0 %v538_v42, %s2545_s14  ;;  %v721_v42 = vld [vmem:[#allocation2 + $0x7a] sm:$0xff] }
  0x5b   : > { %620 = vrot.lane.b32.xlu1 %v2946_v43, %s2545_s14 }
  0x5c   : > { %626 = vrot.lane.b32.xlu0 %v540_v46, %s2545_s14  ;;  %v720_v46 = vld [vmem:[#allocation2 + $0x6a] sm:$0xff] }
  0x5f   : > { %624 = vrot.lane.b32.xlu1 %v539_v57, %s2545_s14  ;;  %v3044_v57 = vld [vmem:[#allocation2 + $0xda] sm:$0xff] }
  0x60   : > { %630 = vrot.lane.b32.xlu0 %v542_v58, %s2545_s14  ;;  %v3050_v58 = vld [vmem:[#allocation2 + $0xca] sm:$0xff] }
  0x63   : > { %628 = vrot.lane.b32.xlu1 %v541_v2, %s2545_s14  ;;  %v733_v2 = vld [vmem:[#allocation2 + $0x10a] sm:$0xff] }
  0x64   : > { %634 = vrot.lane.b32.xlu0 %v544_v62, %s2545_s14  ;;  %v732_v62 = vld [vmem:[#allocation2 + $0xfa] sm:$0xff] }
  0x67   : > { %632 = vrot.lane.b32.xlu1 %v543_v3, %s2545_s14  ;;  %v735_v3 = vld [vmem:[#allocation2 + $0x122] sm:$0xff] }
  0x68   : > { %638 = vrot.lane.b32.xlu0 %v2992_v4, %s2545_s14 }
  0x6b   : > { %636 = vrot.lane.b32.xlu1 %v545_v5, %s2545_s14 }
  0x6c   : > { %642 = vrot.lane.b32.xlu0 %v3001_v6, %s2545_s14 }
  0x6f   : > { %640 = vrot.lane.b32.xlu1 %v3006_v7, %s2545_s14 }
  0x70   : > { %775 = vrot.lane.b32.xlu0 %v711_v8, %s2546_s15  ;;  %v734_v8 = vld [vmem:[#allocation2 + $0x112] sm:$0xff] }
  0x73   : > { %644 = vrot.lane.b32.xlu1 %v3011_v9, %s2545_s14  ;;  %s2291_s14 = sshll.u32 %s217_s13, 4  ;;  %s2292_s14 = int_to_ptr.vmem [resolvable:$true] %s2291_s14 }
  0x74   : > { %779 = vrot.lane.b32.xlu0 %v713_v10, %s2546_s15  ;;  %v737_v10 = vld [vmem:[#allocation2 + $0x13a] sm:$0xff] }
  0x77   : > { %777 = vrot.lane.b32.xlu1 %v712_v11, %s2546_s15 }
  0x78   : > { %783 = vrot.lane.b32.xlu0 %v715_v12, %s2546_s15  ;;  %v736_v12 = vld [vmem:[#allocation2 + $0x12a] sm:$0xff] }
  0x7b   : > { %781 = vrot.lane.b32.xlu1 %v714_v15, %s2546_s15  ;;  %v3066_v15 = vld [vmem:[#allocation2 + $0x152] sm:$0xff] }
  0x7c   : > { %787 = vrot.lane.b32.xlu0 %v717_v16, %s2546_s15  ;;  %v3071_v16 = vld [vmem:[#allocation2 + $0x142] sm:$0xff] }
  0x7f   : > { %785 = vrot.lane.b32.xlu1 %v716_v19, %s2546_s15  ;;  %v3073_v19 = vld [vmem:[#allocation2 + $0x16a] sm:$0xff] }
  0x80   : > { %791 = vrot.lane.b32.xlu0 %v719_v20, %s2546_s15 }
  0x83   : > { %789 = vrot.lane.b32.xlu1 %v718_v21, %s2546_s15 }
  0x84   : > { %795 = vrot.lane.b32.xlu0 %v721_v42, %s2546_s15  ;;  %v3081_v42 = vld [vmem:[#allocation2 + $0x15a] sm:$0xff] }
  0x87   : > { %793 = vrot.lane.b32.xlu1 %v720_v46, %s2546_s15 }
  0x88   : > { %799 = vrot.lane.b32.xlu0 %v3024_v47, %s2546_s15 }
  0x8b   : > { %797 = vrot.lane.b32.xlu1 %v722_v48, %s2546_s15 }
  0x8c   : > { %803 = vrot.lane.b32.xlu0 %v3029_v49, %s2546_s15 }
  0x8e   : > { %v583_v5 = vpop.permute.xlu0 %582 }
  0x8f   : > { %801 = vrot.lane.b32.xlu1 %v3034_v50, %s2546_s15  ;;  %679 = vst.msk [vmem:[#allocation3] sm:$0xff] %vm678_vm2, %v583_v5 }
  0x90   : > { %807 = vrot.lane.b32.xlu0 %v3036_v55, %s2546_s15 }
  0x93   : > { %805 = vrot.lane.b32.xlu1 %v3042_v56, %s2546_s15 }
  0x94   : > { %811 = vrot.lane.b32.xlu0 %v3044_v57, %s2546_s15 }
  0x97   : > { %809 = vrot.lane.b32.xlu1 %v3050_v58, %s2546_s15 }
  0x98   : > { %815 = vrot.lane.b32.xlu0 %v731_v1, %s2546_s15  ;;  %v3089_v1 = vld [vmem:[#allocation2 + $0x172] sm:$0xff] }
  0x9b   : > { %813 = vrot.lane.b32.xlu1 %v3055_v59, %s2546_s15 }
  0x9c   : > { %819 = vrot.lane.b32.xlu0 %v733_v2, %s2546_s15 }
  0x9f   : > { %817 = vrot.lane.b32.xlu1 %v732_v62, %s2546_s15 }
  0xa0   : > { %823 = vrot.lane.b32.xlu0 %v735_v3, %s2546_s15  ;;  %v585_v11 = vpop.permute.xlu0 %584 }
  0xa1   : > { %680 = vst.msk [vmem:[#allocation3 + $0x8] sm:$0xff] %vm678_vm2, %v585_v11 }
  0xa3   : > { %821 = vrot.lane.b32.xlu1 %v734_v8, %s2546_s15 }
  0xa4   : > { %827 = vrot.lane.b32.xlu0 %v737_v10, %s2546_s15 }
  0xa7   : > { %825 = vrot.lane.b32.xlu1 %v736_v12, %s2546_s15 }
  0xa8   : > { %831 = vrot.lane.b32.xlu0 %v3066_v15, %s2546_s15 }
  0xa9   : > { %v587_v20 = vpop.permute.xlu1 %586 }
  0xaa   : > { %v591_v21 = vpop.permute.xlu0 %590  ;;  %681 = vst.msk [vmem:[#allocation3 + $0x10] sm:$0xff] %vm678_vm2, %v587_v20 }
  0xab   : > { %683 = vst.msk [vmem:[#allocation3 + $0x20] sm:$0xff] %vm678_vm2, %v591_v21  ;;  %829 = vrot.lane.b32.xlu1 %v3071_v16, %s2546_s15 }
  0xac   : > { %835 = vrot.lane.b32.xlu0 %v3073_v19, %s2546_s15 }
  0xad   : > { %v589_v46 = vpop.permute.xlu1 %588 }
  0xae   : > { %v595_v48 = vpop.permute.xlu0 %594  ;;  %682 = vst.msk [vmem:[#allocation3 + $0x18] sm:$0xff] %vm678_vm2, %v589_v46 }
  0xaf   : > { %685 = vst.msk [vmem:[#allocation3 + $0x30] sm:$0xff] %vm678_vm2, %v595_v48  ;;  %833 = vrot.lane.b32.xlu1 %v3081_v42, %s2546_s15 }
  0xb0   : > { %968 = vrot.lane.b32.xlu0 %v2812_v51, %s2547_s16 }
  0xb1   : > { %v593_v2 = vpop.permute.xlu1 %592 }
  0xb2   : > { %v599_v62 = vpop.permute.xlu0 %598  ;;  %684 = vst.msk [vmem:[#allocation3 + $0x28] sm:$0xff] %vm678_vm2, %v593_v2 }
  0xb3   : > { %687 = vst.msk [vmem:[#allocation3 + $0x40] sm:$0xff] %vm678_vm2, %v599_v62  ;;  %837 = vrot.lane.b32.xlu1 %v3089_v1, %s2546_s15 }
  0xb4   : > { %972 = vrot.lane.b32.xlu0 %v2839_v13, %s2547_s16 }
  0xb5   : > { %v597_v3 = vpop.permute.xlu1 %596 }
  0xb6   : > { %v603_v5 = vpop.permute.xlu0 %602  ;;  %686 = vst.msk [vmem:[#allocation3 + $0x38] sm:$0xff] %vm678_vm2, %v597_v3 }
  0xb7   : > { %689 = vst.msk [vmem:[#allocation3 + $0x50] sm:$0xff] %vm678_vm2, %v603_v5  ;;  %970 = vrot.lane.b32.xlu1 %v2814_v52, %s2547_s16 }
  0xb8   : > { %976 = vrot.lane.b32.xlu0 %v2855_v17, %s2547_s16 }
  0xb9   : > { %v601_v51 = vpop.permute.xlu1 %600 }
  0xba   : > { %v607_v8 = vpop.permute.xlu0 %606  ;;  %688 = vst.msk [vmem:[#allocation3 + $0x48] sm:$0xff] %vm678_vm2, %v601_v51 }
  0xbb   : > { %691 = vst.msk [vmem:[#allocation3 + $0x60] sm:$0xff] %vm678_vm2, %v607_v8  ;;  %974 = vrot.lane.b32.xlu1 %v2841_v14, %s2547_s16 }
  0xbc   : > { %980 = vrot.lane.b32.xlu0 %v2867_v23, %s2547_s16 }
  0xbd   : > { %v605_v13 = vpop.permute.xlu1 %604 }
  0xbe   : > { %v611_v10 = vpop.permute.xlu0 %610  ;;  %690 = vst.msk [vmem:[#allocation3 + $0x58] sm:$0xff] %vm678_vm2, %v605_v13 }
  0xbf   : > { %693 = vst.msk [vmem:[#allocation3 + $0x70] sm:$0xff] %vm678_vm2, %v611_v10  ;;  %978 = vrot.lane.b32.xlu1 %v2857_v18, %s2547_s16 }
  0xc0   : > { %984 = vrot.lane.b32.xlu0 %v2871_v25, %s2547_s16 }
  0xc1   : > { %v609_v52 = vpop.permute.xlu1 %608 }
  0xc2   : > { %v615_v17 = vpop.permute.xlu0 %614  ;;  %692 = vst.msk [vmem:[#allocation3 + $0x68] sm:$0xff] %vm678_vm2, %v609_v52  ;;  %v3192_v52 = vld [vmem:[#allocation2 + $0x180] sm:$0xff] }
  0xc3   : > { %695 = vst.msk [vmem:[#allocation3 + $0x80] sm:$0xff] %vm678_vm2, %v615_v17  ;;  %982 = vrot.lane.b32.xlu1 %v2869_v24, %s2547_s16  ;;  %v3194_v17 = vld [vmem:[#allocation2 + $0x181] sm:$0xff] }
  0xc4   : > { %988 = vrot.lane.b32.xlu0 %v2881_v27, %s2547_s16 }
  0xc5   : > { %v613_v14 = vpop.permute.xlu1 %612 }
  0xc6   : > { %v619_v23 = vpop.permute.xlu0 %618  ;;  %694 = vst.msk [vmem:[#allocation3 + $0x78] sm:$0xff] %vm678_vm2, %v613_v14 }
  0xc7   : > { %697 = vst.msk [vmem:[#allocation3 + $0x90] sm:$0xff] %vm678_vm2, %v619_v23  ;;  %986 = vrot.lane.b32.xlu1 %v2879_v26, %s2547_s16 }
  0xc8   : > { %992 = vrot.lane.b32.xlu0 %v2893_v30, %s2547_s16 }
  0xc9   : > { %v617_v18 = vpop.permute.xlu1 %616 }
  0xca   : > { %v623_v25 = vpop.permute.xlu0 %622  ;;  %696 = vst.msk [vmem:[#allocation3 + $0x88] sm:$0xff] %vm678_vm2, %v617_v18  ;;  %v1708_v18 = vld [vmem:[#allocation2 + $0x1a1] sm:$0xff] }
  0xcb   : > { %699 = vst.msk [vmem:[#allocation3 + $0xa0] sm:$0xff] %vm678_vm2, %v623_v25  ;;  %990 = vrot.lane.b32.xlu1 %v2883_v28, %s2547_s16  ;;  %v1901_v25 = vld [vmem:[#allocation2 + $0x1a2] sm:$0xff] }
  0xcc   : > { %996 = vrot.lane.b32.xlu0 %v2897_v32, %s2547_s16 }
  0xcd   : > { %v621_v24 = vpop.permute.xlu1 %620 }
  0xce   : > { %v627_v11 = vpop.permute.xlu0 %626  ;;  %698 = vst.msk [vmem:[#allocation3 + $0x98] sm:$0xff] %vm678_vm2, %v621_v24 }
  0xcf   : > { %701 = vst.msk [vmem:[#allocation3 + $0xb0] sm:$0xff] %vm678_vm2, %v627_v11  ;;  %994 = vrot.lane.b32.xlu1 %v2895_v31, %s2547_s16  ;;  %v3206_v11 = vld [vmem:[#allocation2 + $0x182] sm:$0xff] }
  0xd0   : > { %1000 = vrot.lane.b32.xlu0 %v2910_v34, %s2547_s16 }
  0xd1   : > { %v625_v26 = vpop.permute.xlu1 %624 }
  0xd2   : > { %v631_v12 = vpop.permute.xlu0 %630  ;;  %700 = vst.msk [vmem:[#allocation3 + $0xa8] sm:$0xff] %vm678_vm2, %v625_v26 }
  0xd3   : > { %703 = vst.msk [vmem:[#allocation3 + $0xc0] sm:$0xff] %vm678_vm2, %v631_v12  ;;  %998 = vrot.lane.b32.xlu1 %v2908_v33, %s2547_s16 }
  0xd4   : > { %1004 = vrot.lane.b32.xlu0 %v2922_v37, %s2547_s16 }
  0xd5   : > { %v629_v20 = vpop.permute.xlu1 %628 }
  0xd6   : > { %v635_v21 = vpop.permute.xlu0 %634  ;;  %702 = vst.msk [vmem:[#allocation3 + $0xb8] sm:$0xff] %vm678_vm2, %v629_v20 }
  0xd7   : > { %705 = vst.msk [vmem:[#allocation3 + $0xd0] sm:$0xff] %vm678_vm2, %v635_v21  ;;  %1002 = vrot.lane.b32.xlu1 %v2912_v35, %s2547_s16 }
  0xd8   : > { %1008 = vrot.lane.b32.xlu0 %v2934_v39, %s2547_s16  ;;  %v3163_v39 = vld [vmem:[#allocation2 + $0x189] sm:$0xff] }
  0xd9   : > { %v633_v46 = vpop.permute.xlu1 %632 }
  0xda   : > { %v639_v48 = vpop.permute.xlu0 %638  ;;  %704 = vst.msk [vmem:[#allocation3 + $0xc8] sm:$0xff] %vm678_vm2, %v633_v46 }
  0xdb   : > { %707 = vst.msk [vmem:[#allocation3 + $0xe0] sm:$0xff] %vm678_vm2, %v639_v48  ;;  %1006 = vrot.lane.b32.xlu1 %v2924_v38, %s2547_s16 }
  0xdc   : > { %1012 = vrot.lane.b32.xlu0 %v2949_v44, %s2547_s16  ;;  %v3173_v44 = vld [vmem:[#allocation2 + $0x18a] sm:$0xff] }
  0xdd   : > { %v637_v37 = vpop.permute.xlu1 %636 }
  0xde   : > { %v643_v2 = vpop.permute.xlu0 %642  ;;  %706 = vst.msk [vmem:[#allocation3 + $0xd8] sm:$0xff] %vm678_vm2, %v637_v37  ;;  %v1707_v37 = vld [vmem:[#allocation2 + $0x199] sm:$0xff] }
  0xdf   : > { %709 = vst.msk [vmem:[#allocation3 + $0xf0] sm:$0xff] %vm678_vm2, %v643_v2  ;;  %1010 = vrot.lane.b32.xlu1 %v2936_v40, %s2547_s16  ;;  %v3171_v40 = vld [vmem:[#allocation2 + $0x188] sm:$0xff] }
  0xe0   : > { %1016 = vrot.lane.b32.xlu0 %v2964_v53, %s2547_s16 }
  0xe1   : > { %v641_v62 = vpop.permute.xlu1 %640 }
  0xe2   : > { %v776_v38 = vpop.permute.xlu0 %775  ;;  %708 = vst.msk [vmem:[#allocation3 + $0xe8] sm:$0xff] %vm678_vm2, %v641_v62 }
  0xe3   : > { %872 = vst.msk [vmem:[#allocation3] sm:$0xff] %vm871_vm3, %v776_v38  ;;  %1014 = vrot.lane.b32.xlu1 %v2951_v45, %s2547_s16  ;;  %v1515_v45 = vld [vmem:[#allocation2 + $0x1a0] sm:$0xff] }
  0xe4   : > { %1223 = vrot.lane.b32.xlu0 %v3163_v39, %s2548_s17 }
  0xe5   : > { %v645_v3 = vpop.permute.xlu1 %644 }
  0xe6   : > { %v780_v5 = vpop.permute.xlu0 %779  ;;  %710 = vst.msk [vmem:[#allocation3 + $0xf8] sm:$0xff] %vm678_vm2, %v645_v3 }
  0xe7   : > { %874 = vst.msk [vmem:[#allocation3 + $0x10] sm:$0xff] %vm871_vm3, %v780_v5  ;;  %1030 = vrot.lane.b32.xlu1 %v3171_v40, %s2547_s16  ;;  %v1900_v5 = vld [vmem:[#allocation2 + $0x19a] sm:$0xff] }
  0xe8   : > { %1416 = vrot.lane.b32.xlu0 %v3173_v44, %s2549_s23 }
  0xe9   : > { %v778_v51 = vpop.permute.xlu1 %777 }
  0xea   : > { %v784_v8 = vpop.permute.xlu0 %783  ;;  %873 = vst.msk [vmem:[#allocation3 + $0x8] sm:$0xff] %vm871_vm3, %v778_v51 }
  0xeb   : > { %876 = vst.msk [vmem:[#allocation3 + $0x20] sm:$0xff] %vm871_vm3, %v784_v8  ;;  %1191 = vrot.lane.b32.xlu1 %v2938_v41, %s2548_s17 }
  0xec   : > { %1610 = vrot.lane.b32.xlu0 %v1515_v45, %s2550_s25 }
  0xed   : > { %v782_v13 = vpop.permute.xlu1 %781 }
  0xee   : > { %v788_v10 = vpop.permute.xlu0 %787  ;;  %875 = vst.msk [vmem:[#allocation3 + $0x18] sm:$0xff] %vm871_vm3, %v782_v13 }
  0xef   : > { %878 = vst.msk [vmem:[#allocation3 + $0x30] sm:$0xff] %vm871_vm3, %v788_v10  ;;  %1384 = vrot.lane.b32.xlu1 %v3050_v58, %s2549_s23 }
  0xf0   : > { %1578 = vrot.lane.b32.xlu0 %v2912_v35, %s2550_s25 }
  0xf1   : > { %v786_v14 = vpop.permute.xlu1 %785 }
  0xf2   : > { %v792_v23 = vpop.permute.xlu0 %791  ;;  %877 = vst.msk [vmem:[#allocation3 + $0x28] sm:$0xff] %vm871_vm3, %v786_v14 }
  0xf3   : > { %880 = vst.msk [vmem:[#allocation3 + $0x40] sm:$0xff] %vm871_vm3, %v792_v23  ;;  %1028 = vrot.lane.b32.xlu1 %v3192_v52, %s2547_s16 }
  0xf4   : > { %1221 = vrot.lane.b32.xlu0 %v3194_v17, %s2548_s17 }
  0xf5   : > { %v790_v24 = vpop.permute.xlu1 %789 }
  0xf6   : > { %v796_v35 = vpop.permute.xlu0 %795  ;;  %879 = vst.msk [vmem:[#allocation3 + $0x38] sm:$0xff] %vm871_vm3, %v790_v24 }
  0xf7   : > { %882 = vst.msk [vmem:[#allocation3 + $0x50] sm:$0xff] %vm871_vm3, %v796_v35  ;;  %1803 = vrot.lane.b32.xlu1 %v1708_v18, %s2551_s26 }
  0xf8   : > { %1996 = vrot.lane.b32.xlu0 %v1901_v25, %s2552_s30 }
  0xf9   : > { %v794_v26 = vpop.permute.xlu1 %793 }
  0xfa   : > { %v800_v12 = vpop.permute.xlu0 %799  ;;  %881 = vst.msk [vmem:[#allocation3 + $0x48] sm:$0xff] %vm871_vm3, %v794_v26 }
  0xfb   : > { %884 = vst.msk [vmem:[#allocation3 + $0x60] sm:$0xff] %vm871_vm3, %v800_v12  ;;  %1771 = vrot.lane.b32.xlu1 %v2946_v43, %s2551_s26  ;;  %v1514_v43 = vld [vmem:[#allocation2 + $0x198] sm:$0xff] }
  0xfc   : > { %1414 = vrot.lane.b32.xlu0 %v3206_v11, %s2549_s23 }
  0xfd   : > { %v798_v20 = vpop.permute.xlu1 %797 }
  0xfe   : > { %v804_v21 = vpop.permute.xlu0 %803  ;;  %883 = vst.msk [vmem:[#allocation3 + $0x58] sm:$0xff] %vm871_vm3, %v798_v20 }
  0xff   : > { %886 = vst.msk [vmem:[#allocation3 + $0x70] sm:$0xff] %vm871_vm3, %v804_v21  ;;  %1189 = vrot.lane.b32.xlu1 %v2865_v22, %s2548_s17 }
 0x100   : > { %1382 = vrot.lane.b32.xlu0 %v3036_v55, %s2549_s23 }
 0x101   : > { %v802_v46 = vpop.permute.xlu1 %801 }
 0x102   : > { %v808_v48 = vpop.permute.xlu0 %807  ;;  %885 = vst.msk [vmem:[#allocation3 + $0x68] sm:$0xff] %vm871_vm3, %v802_v46 }
 0x103   : > { %888 = vst.msk [vmem:[#allocation3 + $0x80] sm:$0xff] %vm871_vm3, %v808_v48  ;;  %1964 = vrot.lane.b32.xlu1 %v3055_v59, %s2552_s30 }
 0x104   : > { %1026 = vrot.lane.b32.xlu0 %v2990_v0, %s2547_s16 }
 0x105   : > { %v806_v2 = vpop.permute.xlu1 %805 }
 0x106   : > { %v812_v62 = vpop.permute.xlu0 %811  ;;  %887 = vst.msk [vmem:[#allocation3 + $0x78] sm:$0xff] %vm871_vm3, %v806_v2 }
 0x107   : > { %890 = vst.msk [vmem:[#allocation3 + $0x90] sm:$0xff] %vm871_vm3, %v812_v62  ;;  %1608 = vrot.lane.b32.xlu1 %v1514_v43, %s2550_s25 }
 0x108   : > { %1801 = vrot.lane.b32.xlu0 %v1707_v37, %s2551_s26 }
 0x109   : > { %v810_v22 = vpop.permute.xlu1 %809 }
 0x10a   : > { %v816_v38 = vpop.permute.xlu0 %815  ;;  %889 = vst.msk [vmem:[#allocation3 + $0x88] sm:$0xff] %vm871_vm3, %v810_v22  ;;  %v3370_v22 = vld [vmem:[#allocation2 + $0x141] sm:$0xff] }
 0x10b   : > { %892 = vst.msk [vmem:[#allocation3 + $0xa0] sm:$0xff] %vm871_vm3, %v816_v38  ;;  %1576 = vrot.lane.b32.xlu1 %v2910_v34, %s2550_s25  ;;  %v3372_v38 = vld [vmem:[#allocation2 + $0x81] sm:$0xff] }
 0x10c   : > { %1769 = vrot.lane.b32.xlu0 %v2914_v36, %s2551_s26 }
 0x10d   : > { %v814_v59 = vpop.permute.xlu1 %813 }
 0x10e   : > { %v820_v3 = vpop.permute.xlu0 %819  ;;  %891 = vst.msk [vmem:[#allocation3 + $0x98] sm:$0xff] %vm871_vm3, %v814_v59 }
 0x10f   : > { %894 = vst.msk [vmem:[#allocation3 + $0xb0] sm:$0xff] %vm871_vm3, %v820_v3  ;;  %1219 = vrot.lane.b32.xlu1 %v3011_v9, %s2548_s17 }
 0x110   : > { %1187 = vrot.lane.b32.xlu0 %v2885_v29, %s2548_s17 }
 0x111   : > { %v818_v45 = vpop.permute.xlu1 %817 }
 0x112   : > { %v824_v51 = vpop.permute.xlu0 %823  ;;  %893 = vst.msk [vmem:[#allocation3 + $0xa8] sm:$0xff] %vm871_vm3, %v818_v45 }
 0x113   : > { %896 = vst.msk [vmem:[#allocation3 + $0xc0] sm:$0xff] %vm871_vm3, %v824_v51  ;;  %1994 = vrot.lane.b32.xlu1 %v1900_v5, %s2552_s30 }
 0x114   : > { %1962 = vrot.lane.b32.xlu0 %v3044_v57, %s2552_s30 }
 0x115   : > { %v822_v34 = vpop.permute.xlu1 %821 }
 0x116   : > { %v828_v36 = vpop.permute.xlu0 %827  ;;  %895 = vst.msk [vmem:[#allocation3 + $0xb8] sm:$0xff] %vm871_vm3, %v822_v34  ;;  %v3391_v34 = vld [vmem:[#allocation2 + $0x82] sm:$0xff] }
 0x117   : > { %898 = vst.msk [vmem:[#allocation3 + $0xd0] sm:$0xff] %vm871_vm3, %v828_v36  ;;  %1412 = vrot.lane.b32.xlu1 %v3089_v1, %s2549_s23 }
 0x118   : > { %1606 = vrot.lane.b32.xlu0 %v3171_v40, %s2550_s25 }
 0x119   : > { %v826_v29 = vpop.permute.xlu1 %825 }
 0x11a   : > { %v832_v8 = vpop.permute.xlu0 %831  ;;  %897 = vst.msk [vmem:[#allocation3 + $0xc8] sm:$0xff] %vm871_vm3, %v826_v29  ;;  %v1702_v29 = vld [vmem:[#allocation2 + $0x159] sm:$0xff] }
 0x11b   : > { %900 = vst.msk [vmem:[#allocation3 + $0xe0] sm:$0xff] %vm871_vm3, %v832_v8  ;;  %1380 = vrot.lane.b32.xlu1 %v3042_v56, %s2549_s23 }
 0x11c   : > { %1574 = vrot.lane.b32.xlu0 %v2908_v33, %s2550_s25 }
 0x11d   : > { %v830_v57 = vpop.permute.xlu1 %829 }
 0x11e   : > { %v836_v13 = vpop.permute.xlu0 %835  ;;  %899 = vst.msk [vmem:[#allocation3 + $0xd8] sm:$0xff] %vm871_vm3, %v830_v57  ;;  %v3403_v57 = vld [vmem:[#allocation2 + $0x139] sm:$0xff] }
 0x11f   : > { %902 = vst.msk [vmem:[#allocation3 + $0xf0] sm:$0xff] %vm871_vm3, %v836_v13  ;;  %1024 = vrot.lane.b32.xlu1 %v2988_v63, %s2547_s16 }
 0x120   : > { %1217 = vrot.lane.b32.xlu0 %v3001_v6, %s2548_s17  ;;  %v3277_v6 = vld [vmem:[#allocation2 + $0xa9] sm:$0xff] }
 0x121   : > { %v834_v40 = vpop.permute.xlu1 %833 }
 0x122   : > { %v969_v10 = vpop.permute.xlu0 %968  ;;  %901 = vst.msk [vmem:[#allocation3 + $0xe8] sm:$0xff] %vm871_vm3, %v834_v40 }
 0x123   : > { %1065 = vst.msk [vmem:[#allocation3] sm:$0xff] %vm1064_vm4, %v969_v10  ;;  %1799 = vrot.lane.b32.xlu1 %v3163_v39, %s2551_s26  ;;  %v3407_v10 = vld [vmem:[#allocation2 + $0x79] sm:$0xff] }
 0x124   : > { %1992 = vrot.lane.b32.xlu0 %v3173_v44, %s2552_s30 }
 0x125   : > { %v838_v33 = vpop.permute.xlu1 %837 }
 0x126   : > { %v973_v14 = vpop.permute.xlu0 %972  ;;  %903 = vst.msk [vmem:[#allocation3 + $0xf8] sm:$0xff] %vm871_vm3, %v838_v33 }
 0x127   : > { %1067 = vst.msk [vmem:[#allocation3 + $0x10] sm:$0xff] %vm1064_vm4, %v973_v14  ;;  %1767 = vrot.lane.b32.xlu1 %v2938_v41, %s2551_s26 }
 0x128   : > { %1410 = vrot.lane.b32.xlu0 %v3073_v19, %s2549_s23 }
 0x129   : > { %v971_v23 = vpop.permute.xlu1 %970 }
 0x12a   : > { %v977_v18 = vpop.permute.xlu0 %976  ;;  %1066 = vst.msk [vmem:[#allocation3 + $0x8] sm:$0xff] %vm1064_vm4, %v971_v23  ;;  %v3420_v23 = vld [vmem:[#allocation2 + $0x13a] sm:$0xff] }
 0x12b   : > { %1069 = vst.msk [vmem:[#allocation3 + $0x20] sm:$0xff] %vm1064_vm4, %v977_v18  ;;  %1185 = vrot.lane.b32.xlu1 %v3277_v6, %s2548_s17 }
 0x12c   : > { %1378 = vrot.lane.b32.xlu0 %v3029_v49, %s2549_s23  ;;  %v1689_v49 = vld [vmem:[#allocation2 + $0xc1] sm:$0xff] }
 0x12d   : > { %v975_v39 = vpop.permute.xlu1 %974 }
 0x12e   : > { %v981_v44 = vpop.permute.xlu0 %980  ;;  %1068 = vst.msk [vmem:[#allocation3 + $0x18] sm:$0xff] %vm1064_vm4, %v975_v39 }
 0x12f   : > { %1071 = vst.msk [vmem:[#allocation3 + $0x30] sm:$0xff] %vm1064_vm4, %v981_v44  ;;  %1960 = vrot.lane.b32.xlu1 %v3050_v58, %s2552_s30  ;;  %v3302_v58 = vld [vmem:[#allocation2 + $0x99] sm:$0xff] }
 0x130   : > { %1022 = vrot.lane.b32.xlu0 %v2978_v61, %s2547_s16  ;;  %v3427_v44 = vld [vmem:[#allocation2 + $0x7a] sm:$0xff] }
 0x131   : > { %v979_v41 = vpop.permute.xlu1 %978 }
 0x132   : > { %v985_v25 = vpop.permute.xlu0 %984  ;;  %1070 = vst.msk [vmem:[#allocation3 + $0x28] sm:$0xff] %vm1064_vm4, %v979_v41 }
 0x133   : > { %1073 = vst.msk [vmem:[#allocation3 + $0x40] sm:$0xff] %vm1064_vm4, %v985_v25  ;;  %1604 = vrot.lane.b32.xlu1 %v3192_v52, %s2550_s25  ;;  %v1701_v25 = vld [vmem:[#allocation2 + $0x151] sm:$0xff] }
 0x134   : > { %1797 = vrot.lane.b32.xlu0 %v3194_v17, %s2551_s26 }
 0x135   : > { %v983_v24 = vpop.permute.xlu1 %982 }
 0x136   : > { %v989_v35 = vpop.permute.xlu0 %988  ;;  %1072 = vst.msk [vmem:[#allocation3 + $0x38] sm:$0xff] %vm1064_vm4, %v983_v24 }
 0x137   : > { %1075 = vst.msk [vmem:[#allocation3 + $0x50] sm:$0xff] %vm1064_vm4, %v989_v35  ;;  %1572 = vrot.lane.b32.xlu1 %v2897_v32, %s2550_s25 }
 0x138   : > { %1765 = vrot.lane.b32.xlu0 %v1689_v49, %s2551_s26 }
 0x139   : > { %v987_v26 = vpop.permute.xlu1 %986 }
 0x13a   : > { %v993_v12 = vpop.permute.xlu0 %992  ;;  %1074 = vst.msk [vmem:[#allocation3 + $0x48] sm:$0xff] %vm1064_vm4, %v987_v26 }
 0x13b   : > { %1077 = vst.msk [vmem:[#allocation3 + $0x60] sm:$0xff] %vm1064_vm4, %v993_v12  ;;  %1215 = vrot.lane.b32.xlu1 %v3006_v7, %s2548_s17 }
 0x13c   : > { %1183 = vrot.lane.b32.xlu0 %v3302_v58, %s2548_s17 }
 0x13d   : > { %v991_v52 = vpop.permute.xlu1 %990 }
 0x13e   : > { %v997_v17 = vpop.permute.xlu0 %996  ;;  %1076 = vst.msk [vmem:[#allocation3 + $0x58] sm:$0xff] %vm1064_vm4, %v991_v52  ;;  %v3444_v52 = vld [vmem:[#allocation2 + $0x69] sm:$0xff] }
 0x13f   : > { %1079 = vst.msk [vmem:[#allocation3 + $0x70] sm:$0xff] %vm1064_vm4, %v997_v17  ;;  %1990 = vrot.lane.b32.xlu1 %v3206_v11, %s2552_s30 }
 0x140   : > { %1958 = vrot.lane.b32.xlu0 %v3036_v55, %s2552_s30 }
 0x141   : > { %v995_v32 = vpop.permute.xlu1 %994 }
 0x142   : > { %v1001_v20 = vpop.permute.xlu0 %1000  ;;  %1078 = vst.msk [vmem:[#allocation3 + $0x68] sm:$0xff] %vm1064_vm4, %v995_v32 }
 0x143   : > { %1081 = vst.msk [vmem:[#allocation3 + $0x80] sm:$0xff] %vm1064_vm4, %v1001_v20  ;;  %1408 = vrot.lane.b32.xlu1 %v3081_v42, %s2549_s23  ;;  %v1878_v20 = vld [vmem:[#allocation2 + $0x92] sm:$0xff] }
 0x144   : > { %1602 = vrot.lane.b32.xlu0 %v2990_v0, %s2550_s25 }
 0x145   : > { %v999_v7 = vpop.permute.xlu1 %998 }
 0x146   : > { %v1005_v21 = vpop.permute.xlu0 %1004  ;;  %1080 = vst.msk [vmem:[#allocation3 + $0x78] sm:$0xff] %vm1064_vm4, %v999_v7  ;;  %v3457_v7 = vld [vmem:[#allocation2 + $0x12a] sm:$0xff] }
 0x147   : > { %1083 = vst.msk [vmem:[#allocation3 + $0x90] sm:$0xff] %vm1064_vm4, %v1005_v21  ;;  %1376 = vrot.lane.b32.xlu1 %v3034_v50, %s2549_s23 }
 0x148   : > { %1570 = vrot.lane.b32.xlu0 %v2895_v31, %s2550_s25  ;;  %v1688_v31 = vld [vmem:[#allocation2 + $0xb1] sm:$0xff] }
 0x149   : > { %v1003_v55 = vpop.permute.xlu1 %1002 }
 0x14a   : > { %v1009_v11 = vpop.permute.xlu0 %1008  ;;  %1082 = vst.msk [vmem:[#allocation3 + $0x88] sm:$0xff] %vm1064_vm4, %v1003_v55 }
 0x14b   : > { %1085 = vst.msk [vmem:[#allocation3 + $0xa0] sm:$0xff] %vm1064_vm4, %v1009_v11  ;;  %1020 = vrot.lane.b32.xlu1 %v2976_v60, %s2547_s16  ;;  %v3464_v11 = vld [vmem:[#allocation2 + $0x6a] sm:$0xff] }
 0x14c   : > { %1213 = vrot.lane.b32.xlu0 %v2992_v4, %s2548_s17  ;;  %v3345_v4 = vld [vmem:[#allocation2 + $0x91] sm:$0xff] }
 0x14d   : > { %v1007_v0 = vpop.permute.xlu1 %1006 }
 0x14e   : > { %v1013_v46 = vpop.permute.xlu0 %1012  ;;  %1084 = vst.msk [vmem:[#allocation3 + $0x98] sm:$0xff] %vm1064_vm4, %v1007_v0 }
 0x14f   : > { %1087 = vst.msk [vmem:[#allocation3 + $0xb0] sm:$0xff] %vm1064_vm4, %v1013_v46  ;;  %1795 = vrot.lane.b32.xlu1 %v3011_v9, %s2551_s26 }
 0x150   : > { %1988 = vrot.lane.b32.xlu0 %v3089_v1, %s2552_s30 }
 0x151   : > { %v1011_v50 = vpop.permute.xlu1 %1010 }
 0x152   : > { %v1017_v48 = vpop.permute.xlu0 %1016  ;;  %1086 = vst.msk [vmem:[#allocation3 + $0xa8] sm:$0xff] %vm1064_vm4, %v1011_v50 }
 0x153   : > { %1089 = vst.msk [vmem:[#allocation3 + $0xc0] sm:$0xff] %vm1064_vm4, %v1017_v48  ;;  %1763 = vrot.lane.b32.xlu1 %v1688_v31, %s2551_s26  ;;  %v1491_v31 = vld [vmem:[#allocation2 + $0x80] sm:$0xff] }
 0x154   : > { %1406 = vrot.lane.b32.xlu0 %v3066_v15, %s2549_s23  ;;  %v1703_v15 = vld [vmem:[#allocation2 + $0x169] sm:$0xff] }
 0x155   : > { %v1015_v43 = vpop.permute.xlu1 %1014 }
 0x156   : > { %v1224_v37 = vpop.permute.xlu0 %1223  ;;  %1088 = vst.msk [vmem:[#allocation3 + $0xb8] sm:$0xff] %vm1064_vm4, %v1015_v43 }
 0x157   : > { %1181 = vrot.lane.b32.xlu1 %v3345_v4, %s2548_s17 }
 0x158   : > { %1374 = vrot.lane.b32.xlu0 %v3024_v47, %s2549_s23 }
 0x159   : > { %v1031_v9 = vpop.permute.xlu1 %1030 }
 0x15a   : > { %v1417_v1 = vpop.permute.xlu0 %1416  ;;  %1096 = vst.msk [vmem:[#allocation3 + $0xf8] sm:$0xff] %vm1064_vm4, %v1031_v9  ;;  %v3482_v9 = vld [vmem:[#allocation2 + $0x61] sm:$0xff] }
 0x15b   : > { %1956 = vrot.lane.b32.xlu1 %v3042_v56, %s2552_s30  ;;  %1289 = vst.msk [vmem:[#allocation3 + $0xf8] sm:$0xff] %vm1257_vm5, %v1224_v37 }
 0x15c   : > { %1018 = vrot.lane.b32.xlu0 %v2966_v54, %s2547_s16  ;;  %1482 = vst.msk [vmem:[#allocation3 + $0xf8] sm:$0xff] %vm1450_vm6, %v1417_v1  ;;  %v1893_v1 = vld [vmem:[#allocation2 + $0x142] sm:$0xff] }
 0x15d   : > { %v1192_v2 = vpop.permute.xlu1 %1191 }
 0x15e   : > { %v1611_v47 = vpop.permute.xlu0 %1610  ;;  %1273 = vst.msk [vmem:[#allocation3 + $0x78] sm:$0xff] %vm1257_vm5, %v1192_v2 }
 0x15f   : > { %1676 = vst.msk [vmem:[#allocation3 + $0xf8] sm:$0xff] %vm1644_vm7, %v1611_v47  ;;  %1600 = vrot.lane.b32.xlu1 %v2988_v63, %s2550_s25  ;;  %v3493_v47 = vld [vmem:[#allocation2 + $0x122] sm:$0xff] }
 0x160   : > { %1793 = vrot.lane.b32.xlu0 %v1703_v15, %s2551_s26 }
 0x161   : > { %v1385_v56 = vpop.permute.xlu1 %1384 }
 0x162   : > { %v1579_v62 = vpop.permute.xlu0 %1578  ;;  %1466 = vst.msk [vmem:[#allocation3 + $0x78] sm:$0xff] %vm1450_vm6, %v1385_v56 }
 0x163   : > { %1568 = vrot.lane.b32.xlu1 %v2893_v30, %s2550_s25  ;;  %1660 = vst.msk [vmem:[#allocation3 + $0x78] sm:$0xff] %vm1644_vm7, %v1579_v62  ;;  %v1880_v30 = vld [vmem:[#allocation2 + $0xaa] sm:$0xff] }
 0x164   : > { %1761 = vrot.lane.b32.xlu0 %v3277_v6, %s2551_s26  ;;  %v1879_v6 = vld [vmem:[#allocation2 + $0x9a] sm:$0xff] }
 0x165   : > { %v1029_v59 = vpop.permute.xlu1 %1028 }
 0x166   : > { %v1222_v63 = vpop.permute.xlu0 %1221  ;;  %1095 = vst.msk [vmem:[#allocation3 + $0xf0] sm:$0xff] %vm1064_vm4, %v1029_v59 }
 0x167   : > { %1211 = vrot.lane.b32.xlu1 %v3370_v22, %s2548_s17  ;;  %1288 = vst.msk [vmem:[#allocation3 + $0xf0] sm:$0xff] %vm1257_vm5, %v1222_v63 }
 0x168   : > { %1179 = vrot.lane.b32.xlu0 %v3372_v38, %s2548_s17 }
 0x169   : > { %v1804_v3 = vpop.permute.xlu1 %1803 }
 0x16a   : > { %v1997_v5 = vpop.permute.xlu0 %1996  ;;  %1869 = vst.msk [vmem:[#allocation3 + $0xf8] sm:$0xff] %vm1837_vm8, %v1804_v3 }
 0x16b   : > { %1986 = vrot.lane.b32.xlu1 %v3073_v19, %s2552_s30  ;;  %2062 = vst.msk [vmem:[#allocation3 + $0xf8] sm:$0xff] %vm2030_vm9, %v1997_v5 }
 0x16c   : > { %1954 = vrot.lane.b32.xlu0 %v1880_v30, %s2552_s30  ;;  %v1490_v30 = vld [vmem:[#allocation2 + $0x78] sm:$0xff] }
 0x16d   : > { %v1772_v45 = vpop.permute.xlu1 %1771 }
 0x16e   : > { %v1415_v51 = vpop.permute.xlu0 %1414  ;;  %1853 = vst.msk [vmem:[#allocation3 + $0x78] sm:$0xff] %vm1837_vm8, %v1772_v45 }
 0x16f   : > { %1481 = vst.msk [vmem:[#allocation3 + $0xf0] sm:$0xff] %vm1450_vm6, %v1415_v51  ;;  %1404 = vrot.lane.b32.xlu1 %v3071_v16, %s2549_s23 }
 0x170   : > { %1598 = vrot.lane.b32.xlu0 %v2978_v61, %s2550_s25 }
 0x171   : > { %v1190_v19 = vpop.permute.xlu1 %1189 }
 0x172   : > { %v1383_v36 = vpop.permute.xlu0 %1382  ;;  %1272 = vst.msk [vmem:[#allocation3 + $0x70] sm:$0xff] %vm1257_vm5, %v1190_v19  ;;  %v2095_v8 = vld [vmem:[#allocation3 + $0xf8] sm:$0xff] }
 0x173   : > { %1372 = vrot.lane.b32.xlu1 %v3391_v34, %s2549_s23  ;;  %1465 = vst.msk [vmem:[#allocation3 + $0x70] sm:$0xff] %vm1450_vm6, %v1383_v36  ;;  %2399 = vmatprep.subr.msk.mxu0 %vm2100_vm10, %v2095_v8 }
 0x174   : > { %1791 = vrot.lane.b32.xlu0 %v1702_v29, %s2551_s26 }
 0x175   : > { %v1965_v16 = vpop.permute.xlu1 %1964 }
 0x176   : > { %v1027_v61 = vpop.permute.xlu0 %1026  ;;  %2046 = vst.msk [vmem:[#allocation3 + $0x78] sm:$0xff] %vm2030_vm9, %v1965_v16  ;;  %v3533_v16 = vld [vmem:[#allocation2 + $0x112] sm:$0xff] }
 0x177   : > { %1094 = vst.msk [vmem:[#allocation3 + $0xe8] sm:$0xff] %vm1064_vm4, %v1027_v61  ;;  %1566 = vrot.lane.b32.xlu1 %v2883_v28, %s2550_s25 }
 0x178   : > { %1759 = vrot.lane.b32.xlu0 %v3302_v58, %s2551_s26 }
 0x179   : > { %v1609_v13 = vpop.permute.xlu1 %1608 }
 0x17a   : > { %v1802_v40 = vpop.permute.xlu0 %1801  ;;  %1675 = vst.msk [vmem:[#allocation3 + $0xf0] sm:$0xff] %vm1644_vm7, %v1609_v13  ;;  %v1505_v13 = vld [vmem:[#allocation2 + $0x128] sm:$0xff] }
 0x17b   : > { %1209 = vrot.lane.b32.xlu1 %v3403_v57, %s2548_s17  ;;  %1868 = vst.msk [vmem:[#allocation3 + $0xf0] sm:$0xff] %vm1837_vm8, %v1802_v40  ;;  %v3541_v40 = vld [vmem:[#allocation2 + $0x52] sm:$0xff] }
 0x17c   : > { %1177 = vrot.lane.b32.xlu0 %v3407_v10, %s2548_s17 }
 0x17d   : > { %v1577_v28 = vpop.permute.xlu1 %1576  ;;  %v2079_v33 = vld [vmem:[#allocation3 + $0x78] sm:$0xff] }
 0x17e   : > { %v1770_v14 = vpop.permute.xlu0 %1769  ;;  %1659 = vst.msk [vmem:[#allocation3 + $0x70] sm:$0xff] %vm1644_vm7, %v1577_v28  ;;  %2400 = vmatpush3.xpose.msk.msra.mxu0 %vm2100_vm10, %v2079_v33  ;;  %v1489_v33 = vld [vmem:[#allocation2 + $0x68] sm:$0xff] }
 0x17f   : > { %1984 = vrot.lane.b32.xlu1 %v3081_v42, %s2552_s30  ;;  %1852 = vst.msk [vmem:[#allocation3 + $0x70] sm:$0xff] %vm1837_vm8, %v1770_v14 }
 0x180   : > { %1952 = vrot.lane.b32.xlu0 %v1879_v6, %s2552_s30 }
 0x181   : > { %v1220_v18 = vpop.permute.xlu1 %1219 }
 0x182   : > { %v1188_v39 = vpop.permute.xlu0 %1187  ;;  %1287 = vst.msk [vmem:[#allocation3 + $0xe8] sm:$0xff] %vm1257_vm5, %v1220_v18 }
 0x183   : > { %1271 = vst.msk [vmem:[#allocation3 + $0x68] sm:$0xff] %vm1257_vm5, %v1188_v39  ;;  %1402 = vrot.lane.b32.xlu1 %v3420_v23, %s2549_s23 }
 0x184   : > { %1596 = vrot.lane.b32.xlu0 %v2976_v60, %s2550_s25  ;;  %v3440_v60 = vld [vmem:[#allocation2 + $0x129] sm:$0xff] }
 0x185   : > { %v1995_v42 = vpop.permute.xlu1 %1994 }
 0x186   : > { %v1963_v41 = vpop.permute.xlu0 %1962  ;;  %2061 = vst.msk [vmem:[#allocation3 + $0xf0] sm:$0xff] %vm2030_vm9, %v1995_v42 }
 0x187   : > { %2045 = vst.msk [vmem:[#allocation3 + $0x70] sm:$0xff] %vm2030_vm9, %v1963_v41  ;;  %1370 = vrot.lane.b32.xlu1 %v3427_v44, %s2549_s23 }
 0x188   : > { %1789 = vrot.lane.b32.xlu0 %v1701_v25, %s2551_s26 }
 0x189   : > { %v1413_v49 = vpop.permute.xlu1 %1412 }
 0x18a   : > { %v1607_v24 = vpop.permute.xlu0 %1606  ;;  %1480 = vst.msk [vmem:[#allocation3 + $0xe8] sm:$0xff] %vm1450_vm6, %v1413_v49  ;;  %v3570_v49 = vld [vmem:[#allocation2 + $0x10a] sm:$0xff] }
 0x18b   : > { %1564 = vrot.lane.b32.xlu1 %v2881_v27, %s2550_s25  ;;  %1674 = vst.msk [vmem:[#allocation3 + $0xe8] sm:$0xff] %vm1644_vm7, %v1607_v24  ;;  %v1894_v27 = vld [vmem:[#allocation2 + $0x152] sm:$0xff] }
 0x18c   : > { %1757 = vrot.lane.b32.xlu0 %v3345_v4, %s2551_s26 }
 0x18d   : > { %v1381_v35 = vpop.permute.xlu1 %1380  ;;  %v2094_v58 = vld [vmem:[#allocation3 + $0xf0] sm:$0xff] }
 0x18e   : > { %v1575_v26 = vpop.permute.xlu0 %1574  ;;  %v2078_v12 = vld [vmem:[#allocation3 + $0x70] sm:$0xff]  ;;  %1464 = vst.msk [vmem:[#allocation3 + $0x68] sm:$0xff] %vm1450_vm6, %v1381_v35  ;;  %2401 = vmatprep.subr.msk.mxu0 %vm2100_vm10, %v2094_v58  ;;  %v3578_v58 = vld [vmem:[#allocation2 + $0x4a] sm:$0xff] }
 0x18f   : > { %1207 = vrot.lane.b32.xlu1 %v3440_v60, %s2548_s17  ;;  %1658 = vst.msk [vmem:[#allocation3 + $0x68] sm:$0xff] %vm1644_vm7, %v1575_v26  ;;  %2402 = vmatpush3.xpose.msk.msra.mxu0 %vm2100_vm10, %v2078_v12  ;;  %v1504_v35 = vld [vmem:[#allocation2 + $0x120] sm:$0xff] }
 0x190   : > { %1175 = vrot.lane.b32.xlu0 %v3444_v52, %s2548_s17 }
 0x191   : > { %v1025_v17 = vpop.permute.xlu1 %1024 }
 0x192   : > { %v1218_v32 = vpop.permute.xlu0 %1217  ;;  %1093 = vst.msk [vmem:[#allocation3 + $0xe0] sm:$0xff] %vm1064_vm4, %v1025_v17 }
 0x193   : > { %1982 = vrot.lane.b32.xlu1 %v1894_v27, %s2552_s30  ;;  %1286 = vst.msk [vmem:[#allocation3 + $0xe0] sm:$0xff] %vm1257_vm5, %v1218_v32  ;;  %v1488_v27 = vld [vmem:[#allocation2 + $0x60] sm:$0xff] }
 0x194   : > { %1950 = vrot.lane.b32.xlu0 %v1878_v20, %s2552_s30  ;;  %v3591_v20 = vld [vmem:[#allocation2 + $0xf9] sm:$0xff] }
 0x195   : > { %v1800_v21 = vpop.permute.xlu1 %1799 }
 0x196   : > { %v1993_v55 = vpop.permute.xlu0 %1992  ;;  %1867 = vst.msk [vmem:[#allocation3 + $0xe8] sm:$0xff] %vm1837_vm8, %v1800_v21 }
 0x197   : > { %1400 = vrot.lane.b32.xlu1 %v3457_v7, %s2549_s23  ;;  %2060 = vst.msk [vmem:[#allocation3 + $0xe8] sm:$0xff] %vm2030_vm9, %v1993_v55  ;;  %v3595_v55 = vld [vmem:[#allocation2 + $0x39] sm:$0xff] }
 0x198   : > { %1594 = vrot.lane.b32.xlu0 %v2966_v54, %s2550_s25  ;;  %v3478_v54 = vld [vmem:[#allocation2 + $0x121] sm:$0xff] }
 0x199   : > { %v1768_v0 = vpop.permute.xlu1 %1767 }
 0x19a   : > { %v1411_v46 = vpop.permute.xlu0 %1410  ;;  %1851 = vst.msk [vmem:[#allocation3 + $0x68] sm:$0xff] %vm1837_vm8, %v1768_v0 }
 0x19b   : > { %1479 = vst.msk [vmem:[#allocation3 + $0xe0] sm:$0xff] %vm1450_vm6, %v1411_v46  ;;  %1368 = vrot.lane.b32.xlu1 %v3464_v11, %s2549_s23  ;;  %v3607_v46 = vld [vmem:[#allocation2 + $0xfa] sm:$0xff] }
 0x19c   : > { %1787 = vrot.lane.b32.xlu0 %v3370_v22, %s2551_s26 }
 0x19d   : > { %v1186_v50 = vpop.permute.xlu1 %1185 }
 0x19e   : > { %v1379_v48 = vpop.permute.xlu0 %1378  ;;  %1270 = vst.msk [vmem:[#allocation3 + $0x60] sm:$0xff] %vm1257_vm5, %v1186_v50  ;;  %v2093_v4 = vld [vmem:[#allocation3 + $0xe8] sm:$0xff] }
 0x19f   : > { %1562 = vrot.lane.b32.xlu1 %v1491_v31, %s2550_s25  ;;  %1463 = vst.msk [vmem:[#allocation3 + $0x60] sm:$0xff] %vm1450_vm6, %v1379_v48  ;;  %2403 = vmatprep.subr.msk.mxu0 %vm2100_vm10, %v2093_v4  ;;  %v1503_v4 = vld [vmem:[#allocation2 + $0x110] sm:$0xff] }
 0x1a0   : > { %1755 = vrot.lane.b32.xlu0 %v3372_v38, %s2551_s26  ;;  %v3502_v38 = vld [vmem:[#allocation2 + $0x62] sm:$0xff] }
 0x1a1   : > { %v1961_v43 = vpop.permute.xlu1 %1960 }
 0x1a2   : > { %v1023_v37 = vpop.permute.xlu0 %1022  ;;  %2044 = vst.msk [vmem:[#allocation3 + $0x68] sm:$0xff] %vm2030_vm9, %v1961_v43  ;;  %v3617_v43 = vld [vmem:[#allocation2 + $0x3a] sm:$0xff] }
 0x1a3   : > { %1092 = vst.msk [vmem:[#allocation3 + $0xd8] sm:$0xff] %vm1064_vm4, %v1023_v37  ;;  %1205 = vrot.lane.b32.xlu1 %v3478_v54, %s2548_s17 }
 0x1a4   : > { %1173 = vrot.lane.b32.xlu0 %v3482_v9, %s2548_s17 }
 0x1a5   : > { %v1605_v15 = vpop.permute.xlu1 %1604 }
 0x1a6   : > { %v1798_v2 = vpop.permute.xlu0 %1797  ;;  %1673 = vst.msk [vmem:[#allocation3 + $0xe0] sm:$0xff] %vm1644_vm7, %v1605_v15 }
 0x1a7   : > { %1980 = vrot.lane.b32.xlu1 %v1893_v1, %s2552_s30  ;;  %1866 = vst.msk [vmem:[#allocation3 + $0xe0] sm:$0xff] %vm1837_vm8, %v1798_v2  ;;  %v1487_v1 = vld [vmem:[#allocation2 + $0x50] sm:$0xff] }
 0x1a8   : > { %1948 = vrot.lane.b32.xlu0 %v3391_v34, %s2552_s30  ;;  %v3519_v34 = vld [vmem:[#allocation2 + $0x51] sm:$0xff] }
 0x1a9   : > { %v1573_v56 = vpop.permute.xlu1 %1572  ;;  %v2077_v62 = vld [vmem:[#allocation3 + $0x68] sm:$0xff] }
 0x1aa   : > { %v1766_v22 = vpop.permute.xlu0 %1765  ;;  %1657 = vst.msk [vmem:[#allocation3 + $0x60] sm:$0xff] %vm1644_vm7, %v1573_v56  ;;  %2404 = vmatpush3.xpose.msk.msra.mxu0 %vm2100_vm10, %v2077_v62  ;;  %v3633_v62 = vld [vmem:[#allocation2 + $0x31] sm:$0xff] }
 0x1ab   : > { %1398 = vrot.lane.b32.xlu1 %v3493_v47, %s2549_s23  ;;  %1850 = vst.msk [vmem:[#allocation3 + $0x60] sm:$0xff] %vm1837_vm8, %v1766_v22 }
 0x1ac   : > { %1592 = vrot.lane.b32.xlu0 %v2964_v53, %s2550_s25  ;;  %v3515_v53 = vld [vmem:[#allocation2 + $0x111] sm:$0xff] }
 0x1ad   : > { %v1216_v59 = vpop.permute.xlu1 %1215 }
 0x1ae   : > { %v1184_v63 = vpop.permute.xlu0 %1183  ;;  %1285 = vst.msk [vmem:[#allocation3 + $0xd8] sm:$0xff] %vm1257_vm5, %v1216_v59 }
 0x1af   : > { %1269 = vst.msk [vmem:[#allocation3 + $0x58] sm:$0xff] %vm1257_vm5, %v1184_v63  ;;  %1366 = vrot.lane.b32.xlu1 %v3502_v38, %s2549_s23  ;;  %v3645_v63 = vld [vmem:[#allocation2 + $0xf2] sm:$0xff] }
 0x1b0   : > { %1785 = vrot.lane.b32.xlu0 %v3403_v57, %s2551_s26 }
 0x1b1   : > { %v1991_v3 = vpop.permute.xlu1 %1990 }
 0x1b2   : > { %v1959_v5 = vpop.permute.xlu0 %1958  ;;  %2059 = vst.msk [vmem:[#allocation3 + $0xe0] sm:$0xff] %vm2030_vm9, %v1991_v3 }
 0x1b3   : > { %2043 = vst.msk [vmem:[#allocation3 + $0x60] sm:$0xff] %vm2030_vm9, %v1959_v5  ;;  %1560 = vrot.lane.b32.xlu1 %v1490_v30, %s2550_s25  ;;  %v1502_v5 = vld [vmem:[#allocation2 + $0x108] sm:$0xff] }
 0x1b4   : > { %1753 = vrot.lane.b32.xlu0 %v3407_v10, %s2551_s26 }
 0x1b5   : > { %v1409_v45 = vpop.permute.xlu1 %1408 }
 0x1b6   : > { %v1603_v51 = vpop.permute.xlu0 %1602  ;;  %1478 = vst.msk [vmem:[#allocation3 + $0xd8] sm:$0xff] %vm1450_vm6, %v1409_v45 }
 0x1b7   : > { %1203 = vrot.lane.b32.xlu1 %v3515_v53, %s2548_s17  ;;  %1672 = vst.msk [vmem:[#allocation3 + $0xd8] sm:$0xff] %vm1644_vm7, %v1603_v51  ;;  %v3655_v51 = vld [vmem:[#allocation2 + $0x32] sm:$0xff] }
 0x1b8   : > { %1171 = vrot.lane.b32.xlu0 %v3519_v34, %s2548_s17 }
 0x1b9   : > { %v1377_v19 = vpop.permute.xlu1 %1376  ;;  %v2092_v36 = vld [vmem:[#allocation3 + $0xe0] sm:$0xff] }
 0x1ba   : > { %v1571_v29 = vpop.permute.xlu0 %1570  ;;  %v2076_v8 = vld [vmem:[#allocation3 + $0x60] sm:$0xff]  ;;  %1462 = vst.msk [vmem:[#allocation3 + $0x58] sm:$0xff] %vm1450_vm6, %v1377_v19  ;;  %2405 = vmatprep.subr.msk.mxu0 %vm2100_vm10, %v2092_v36  ;;  %v1486_v36 = vld [vmem:[#allocation2 + $0x48] sm:$0xff] }
 0x1bb   : > { %1978 = vrot.lane.b32.xlu1 %v3420_v23, %s2552_s30  ;;  %1656 = vst.msk [vmem:[#allocation3 + $0x58] sm:$0xff] %vm1644_vm7, %v1571_v29  ;;  %2406 = vmatpush3.xpose.msk.msra.mxu0 %vm2100_vm10, %v2076_v8  ;;  %v3553_v23 = vld [vmem:[#allocation2 + $0x109] sm:$0xff] }
 0x1bc   : > { %1946 = vrot.lane.b32.xlu0 %v3427_v44, %s2552_s30  ;;  %v3557_v44 = vld [vmem:[#allocation2 + $0x49] sm:$0xff] }
 0x1bd   : > { %v1021_v61 = vpop.permute.xlu1 %1020 }
 0x1be   : > { %v1214_v57 = vpop.permute.xlu0 %1213  ;;  %1091 = vst.msk [vmem:[#allocation3 + $0xd0] sm:$0xff] %vm1064_vm4, %v1021_v61 }
 0x1bf   : > { %1396 = vrot.lane.b32.xlu1 %v3533_v16, %s2549_s23  ;;  %1284 = vst.msk [vmem:[#allocation3 + $0xd0] sm:$0xff] %vm1257_vm5, %v1214_v57  ;;  %v1098_v57 = vld [vmem:[#allocation2 + $0x21] sm:$0xff] }
 0x1c0   : > { %1590 = vrot.lane.b32.xlu0 %v1505_v13, %s2550_s25 }
 0x1c1   : > { %v1796_v10 = vpop.permute.xlu1 %1795 }
 0x1c2   : > { %v1989_v28 = vpop.permute.xlu0 %1988  ;;  %1865 = vst.msk [vmem:[#allocation3 + $0xd8] sm:$0xff] %vm1837_vm8, %v1796_v10 }
 0x1c3   : > { %1364 = vrot.lane.b32.xlu1 %v3541_v40, %s2549_s23  ;;  %2058 = vst.msk [vmem:[#allocation3 + $0xd8] sm:$0xff] %vm2030_vm9, %v1989_v28  ;;  %v1307_v28 = vld [vmem:[#allocation2 + $0xe2] sm:$0xff] }
 0x1c4   : > { %1783 = vrot.lane.b32.xlu0 %v3440_v60, %s2551_s26 }
 0x1c5   : > { %v1764_v14 = vpop.permute.xlu1 %1763 }
 0x1c6   : > { %v1407_v6 = vpop.permute.xlu0 %1406  ;;  %1849 = vst.msk [vmem:[#allocation3 + $0x58] sm:$0xff] %vm1837_vm8, %v1764_v14 }
 0x1c7   : > { %1477 = vst.msk [vmem:[#allocation3 + $0xd0] sm:$0xff] %vm1450_vm6, %v1407_v6  ;;  %1558 = vrot.lane.b32.xlu1 %v1489_v33, %s2550_s25  ;;  %v1501_v6 = vld [vmem:[#allocation2 + $0xf8] sm:$0xff] }
 0x1c8   : > { %1751 = vrot.lane.b32.xlu0 %v3444_v52, %s2551_s26 }
 0x1c9   : > { %v1182_v18 = vpop.permute.xlu1 %1181 }
 0x1ca   : > { %v1375_v39 = vpop.permute.xlu0 %1374  ;;  %1268 = vst.msk [vmem:[#allocation3 + $0x50] sm:$0xff] %vm1257_vm5, %v1182_v18  ;;  %v2091_v42 = vld [vmem:[#allocation3 + $0xd8] sm:$0xff] }
 0x1cb   : > { %1201 = vrot.lane.b32.xlu1 %v3553_v23, %s2548_s17  ;;  %1461 = vst.msk [vmem:[#allocation3 + $0x50] sm:$0xff] %vm1450_vm6, %v1375_v39  ;;  %2407 = vmatprep.subr.msk.mxu0 %vm2100_vm10, %v2091_v42  ;;  %v1291_v39 = vld [vmem:[#allocation2 + $0x22] sm:$0xff] }
 0x1cc   : > { %1169 = vrot.lane.b32.xlu0 %v3557_v44, %s2548_s17 }
 0x1cd   : > { %v1957_v41 = vpop.permute.xlu1 %1956 }
 0x1ce   : > { %v1019_v25 = vpop.permute.xlu0 %1018  ;;  %2042 = vst.msk [vmem:[#allocation3 + $0x58] sm:$0xff] %vm2030_vm9, %v1957_v41  ;;  %v1485_v41 = vld [vmem:[#allocation2 + $0x38] sm:$0xff] }
 0x1cf   : > { %1090 = vst.msk [vmem:[#allocation3 + $0xc8] sm:$0xff] %vm1064_vm4, %v1019_v25  ;;  %1976 = vrot.lane.b32.xlu1 %v3457_v7, %s2552_s30 }
 0x1d0   : > { %1944 = vrot.lane.b32.xlu0 %v3464_v11, %s2552_s30 }
 0x1d1   : > { %v1601_v24 = vpop.permute.xlu1 %1600 }
 0x1d2   : > { %v1794_v60 = vpop.permute.xlu0 %1793  ;;  %1671 = vst.msk [vmem:[#allocation3 + $0xd0] sm:$0xff] %vm1644_vm7, %v1601_v24  ;;  %v1113_v24 = vld [vmem:[#allocation2 + $0xd9] sm:$0xff] }
 0x1d3   : > { %1394 = vrot.lane.b32.xlu1 %v3570_v49, %s2549_s23  ;;  %1864 = vst.msk [vmem:[#allocation3 + $0xd0] sm:$0xff] %vm1837_vm8, %v1794_v60 }
 0x1d4   : > { %1588 = vrot.lane.b32.xlu0 %v1504_v35, %s2550_s25  ;;  %v1097_v35 = vld [vmem:[#allocation2 + $0x19] sm:$0xff] }
 0x1d5   : > { %v1569_v26 = vpop.permute.xlu1 %1568  ;;  %v2075_v12 = vld [vmem:[#allocation3 + $0x58] sm:$0xff] }
 0x1d6   : > { %v1762_v52 = vpop.permute.xlu0 %1761  ;;  %1655 = vst.msk [vmem:[#allocation3 + $0x50] sm:$0xff] %vm1644_vm7, %v1569_v26  ;;  %2408 = vmatpush3.xpose.msk.msra.mxu0 %vm2100_vm10, %v2075_v12 }
 0x1d7   : > { %1362 = vrot.lane.b32.xlu1 %v3578_v58, %s2549_s23  ;;  %1848 = vst.msk [vmem:[#allocation3 + $0x50] sm:$0xff] %vm1837_vm8, %v1762_v52  ;;  %v1306_v52 = vld [vmem:[#allocation2 + $0xda] sm:$0xff] }
 0x1d8   : > { %1781 = vrot.lane.b32.xlu0 %v3478_v54, %s2551_s26 }
 0x1d9   : > { %v1212_v17 = vpop.permute.xlu1 %1211 }
 0x1da   : > { %v1180_v32 = vpop.permute.xlu0 %1179  ;;  %1283 = vst.msk [vmem:[#allocation3 + $0xc8] sm:$0xff] %vm1257_vm5, %v1212_v17 }
 0x1db   : > { %1267 = vst.msk [vmem:[#allocation3 + $0x48] sm:$0xff] %vm1257_vm5, %v1180_v32  ;;  %1556 = vrot.lane.b32.xlu1 %v1488_v27, %s2550_s25  ;;  %v1500_v32 = vld [vmem:[#allocation2 + $0xf0] sm:$0xff] }
 0x1dc   : > { %1749 = vrot.lane.b32.xlu0 %v3482_v9, %s2551_s26 }
 0x1dd   : > { %v1987_v7 = vpop.permute.xlu1 %1986 }
 0x1de   : > { %v1955_v21 = vpop.permute.xlu0 %1954  ;;  %2057 = vst.msk [vmem:[#allocation3 + $0xd0] sm:$0xff] %vm2030_vm9, %v1987_v7 }
 0x1df   : > { %2041 = vst.msk [vmem:[#allocation3 + $0x50] sm:$0xff] %vm2030_vm9, %v1955_v21  ;;  %1199 = vrot.lane.b32.xlu1 %v3591_v20, %s2548_s17  ;;  %v1290_v21 = vld [vmem:[#allocation2 + $0x1a] sm:$0xff] }
 0x1e0   : > { %1167 = vrot.lane.b32.xlu0 %v3595_v55, %s2548_s17 }
 0x1e1   : > { %v1405_v11 = vpop.permute.xlu1 %1404 }
 0x1e2   : > { %v1599_v0 = vpop.permute.xlu0 %1598  ;;  %1476 = vst.msk [vmem:[#allocation3 + $0xc8] sm:$0xff] %vm1450_vm6, %v1405_v11 }
 0x1e3   : > { %1974 = vrot.lane.b32.xlu1 %v3493_v47, %s2552_s30  ;;  %1670 = vst.msk [vmem:[#allocation3 + $0xc8] sm:$0xff] %vm1644_vm7, %v1599_v0  ;;  %v3629_v47 = vld [vmem:[#allocation2 + $0xf1] sm:$0xff] }
 0x1e4   : > { %1942 = vrot.lane.b32.xlu0 %v3502_v38, %s2552_s30  ;;  %v1484_v0 = vld [vmem:[#allocation2 + $0x30] sm:$0xff] }
 0x1e5   : > { %v1373_v31 = vpop.permute.xlu1 %1372  ;;  %v2090_v50 = vld [vmem:[#allocation3 + $0xd0] sm:$0xff] }
 0x1e6   : > { %v2074_v48 = vld [vmem:[#allocation3 + $0x50] sm:$0xff]  ;;  %1460 = vst.msk [vmem:[#allocation3 + $0x48] sm:$0xff] %vm1450_vm6, %v1373_v31  ;;  %2409 = vmatprep.subr.msk.mxu0 %vm2100_vm10, %v2090_v50  ;;  %v1792_v54 = vpop.permute.xlu0 %1791 }
 0x1e7   : > { %1392 = vrot.lane.b32.xlu1 %v3607_v46, %s2549_s23  ;;  %1863 = vst.msk [vmem:[#allocation3 + $0xc8] sm:$0xff] %vm1837_vm8, %v1792_v54  ;;  %2410 = vmatpush3.xpose.msk.msra.mxu0 %vm2100_vm10, %v2074_v48 }
 0x1e8   : > { %1586 = vrot.lane.b32.xlu0 %v1503_v4, %s2550_s25  ;;  %v3725_v4 = vld [vmem:[%s3848_s3] sm:$0xf] }
 0x1e9   : > { %v1567_v37 = vpop.permute.xlu1 %1566  ;;  %2431 = vmatprep.mubr.msk.f32.mxu0 %vm2100_vm10, %v3725_v4 }
 0x1ea   : > { %1654 = vst.msk [vmem:[#allocation3 + $0x48] sm:$0xff] %vm1644_vm7, %v1567_v37  ;;  %v1760_v9 = vpop.permute.xlu0 %1759 }
 0x1eb   : > { %1360 = vrot.lane.b32.xlu1 %v3617_v43, %s2549_s23  ;;  %1847 = vst.msk [vmem:[#allocation3 + $0x48] sm:$0xff] %vm1837_vm8, %v1760_v9 }
 0x1ec   : > { %1779 = vrot.lane.b32.xlu0 %v3515_v53, %s2551_s26 }
 0x1ed   : > { %v1210_v15 = vpop.permute.xlu1 %1209 }
 0x1ee   : > { %1282 = vst.msk [vmem:[#allocation3 + $0xc0] sm:$0xff] %vm1257_vm5, %v1210_v15  ;;  %v1178_v2 = vpop.permute.xlu0 %1177 }
 0x1ef   : > { %1554 = vrot.lane.b32.xlu1 %v1487_v1, %s2550_s25  ;;  %1266 = vst.msk [vmem:[#allocation3 + $0x40] sm:$0xff] %vm1257_vm5, %v1178_v2 }
 0x1f0   : > { %1747 = vrot.lane.b32.xlu0 %v3519_v34, %s2551_s26 }
 0x1f1   : > { %v1985_v56 = vpop.permute.xlu1 %1984 }
 0x1f2   : > { %2056 = vst.msk [vmem:[#allocation3 + $0xc8] sm:$0xff] %vm2030_vm9, %v1985_v56  ;;  %v1953_v22 = vpop.permute.xlu0 %1952 }
 0x1f3   : > { %1197 = vrot.lane.b32.xlu1 %v3629_v47, %s2548_s17  ;;  %2040 = vst.msk [vmem:[#allocation3 + $0x48] sm:$0xff] %vm2030_vm9, %v1953_v22 }
 0x1f4   : > { %1165 = vrot.lane.b32.xlu0 %v3633_v62, %s2548_s17 }
 0x1f5   : > { %v1403_v38 = vpop.permute.xlu1 %1402 }
 0x1f6   : > { %1475 = vst.msk [vmem:[#allocation3 + $0xc0] sm:$0xff] %vm1450_vm6, %v1403_v38  ;;  %v1597_v59 = vpop.permute.xlu0 %1596 }
 0x1f7   : > { %1972 = vrot.lane.b32.xlu1 %v3533_v16, %s2552_s30  ;;  %1669 = vst.msk [vmem:[#allocation3 + $0xc0] sm:$0xff] %vm1644_vm7, %v1597_v59  ;;  %v1114_v16 = vld [vmem:[#allocation2 + $0xe1] sm:$0xff] }
 0x1f8   : > { %1940 = vrot.lane.b32.xlu0 %v3541_v40, %s2552_s30 }
 0x1f9   : > { %v1371_v30 = vpop.permute.xlu1 %1370  ;;  %v2089_v3 = vld [vmem:[#allocation3 + $0xc8] sm:$0xff] }
 0x1fa   : > { %1459 = vst.msk [vmem:[#allocation3 + $0x40] sm:$0xff] %vm1450_vm6, %v1371_v30  ;;  %2411 = vmatprep.subr.msk.mxu0 %vm2100_vm10, %v2089_v3  ;;  %v1790_v53 = vpop.permute.xlu0 %1789  ;;  %v2073_v45 = vld [vmem:[#allocation3 + $0x48] sm:$0xff] }
 0x1fb   : > { %1390 = vrot.lane.b32.xlu1 %v3645_v63, %s2549_s23  ;;  %1862 = vst.msk [vmem:[#allocation3 + $0xc0] sm:$0xff] %vm1837_vm8, %v1790_v53  ;;  %2412 = vmatpush3.xpose.msk.msra.mxu0 %vm2100_vm10, %v2073_v45 }
 0x1fc   : > { %1584 = vrot.lane.b32.xlu0 %v1502_v5, %s2550_s25 }
 0x1fd   : > { %v1565_v34 = vpop.permute.xlu1 %1564 }
 0x1fe   : > { %1653 = vst.msk [vmem:[#allocation3 + $0x40] sm:$0xff] %vm1644_vm7, %v1565_v34  ;;  %v1758_v19 = vpop.permute.xlu0 %1757 }
 0x1ff   : > { %1358 = vrot.lane.b32.xlu1 %v3655_v51, %s2549_s23  ;;  %1846 = vst.msk [vmem:[#allocation3 + $0x40] sm:$0xff] %vm1837_vm8, %v1758_v19 }
 0x200   : > { %1777 = vrot.lane.b32.xlu0 %v3553_v23, %s2551_s26 }
 0x201   : > { %v1208_v29 = vpop.permute.xlu1 %1207 }
 0x202   : > { %1281 = vst.msk [vmem:[#allocation3 + $0xb8] sm:$0xff] %vm1257_vm5, %v1208_v29  ;;  %v1176_v8 = vpop.permute.xlu0 %1175 }
 0x203   : > { %1552 = vrot.lane.b32.xlu1 %v1486_v36, %s2550_s25  ;;  %1265 = vst.msk [vmem:[#allocation3 + $0x38] sm:$0xff] %vm1257_vm5, %v1176_v8 }
 0x204   : > { %1745 = vrot.lane.b32.xlu0 %v3557_v44, %s2551_s26 }
 0x205   : > { %v1983_v61 = vpop.permute.xlu1 %1982 }
 0x206   : > { %2055 = vst.msk [vmem:[#allocation3 + $0xc0] sm:$0xff] %vm2030_vm9, %v1983_v61  ;;  %v1951_v13 = vpop.permute.xlu0 %1950 }
 0x207   : > { %1195 = vrot.lane.b32.xlu1 %v1114_v16, %s2548_s17  ;;  %2039 = vst.msk [vmem:[#allocation3 + $0x40] sm:$0xff] %vm2030_vm9, %v1951_v13 }
 0x208   : > { %1163 = vrot.lane.b32.xlu0 %v1098_v57, %s2548_s17 }
 0x209   : > { %v1401_v40 = vpop.permute.xlu1 %1400 }
 0x20a   : > { %1474 = vst.msk [vmem:[#allocation3 + $0xb8] sm:$0xff] %vm1450_vm6, %v1401_v40  ;;  %v1595_v10 = vpop.permute.xlu0 %1594 }
 0x20b   : > { %1970 = vrot.lane.b32.xlu1 %v3570_v49, %s2552_s30  ;;  %1668 = vst.msk [vmem:[#allocation3 + $0xb8] sm:$0xff] %vm1644_vm7, %v1595_v10 }
 0x20c   : > { %1938 = vrot.lane.b32.xlu0 %v3578_v58, %s2552_s30 }
 0x20d   : > { %v1369_v33 = vpop.permute.xlu1 %1368  ;;  %v2088_v14 = vld [vmem:[#allocation3 + $0xc0] sm:$0xff] }
 0x20e   : > { %1458 = vst.msk [vmem:[#allocation3 + $0x38] sm:$0xff] %vm1450_vm6, %v1369_v33  ;;  %2413 = vmatprep.subr.msk.mxu0 %vm2100_vm10, %v2088_v14  ;;  %v1788_v23 = vpop.permute.xlu0 %1787  ;;  %v2072_v18 = vld [vmem:[#allocation3 + $0x40] sm:$0xff] }
 0x20f   : > { %1388 = vrot.lane.b32.xlu1 %v1307_v28, %s2549_s23  ;;  %1861 = vst.msk [vmem:[#allocation3 + $0xb8] sm:$0xff] %vm1837_vm8, %v1788_v23  ;;  %2414 = vmatpush3.xpose.msk.msra.mxu0 %vm2100_vm10, %v2072_v18 }
 0x210   : > { %1582 = vrot.lane.b32.xlu0 %v1501_v6, %s2550_s25 }
 0x211   : > { %v1563_v44 = vpop.permute.xlu1 %1562 }
 0x212   : > { %1652 = vst.msk [vmem:[#allocation3 + $0x38] sm:$0xff] %vm1644_vm7, %v1563_v44  ;;  %v1756_v42 = vpop.permute.xlu0 %1755 }
 0x213   : > { %1356 = vrot.lane.b32.xlu1 %v1291_v39, %s2549_s23  ;;  %1845 = vst.msk [vmem:[#allocation3 + $0x38] sm:$0xff] %vm1837_vm8, %v1756_v42 }
 0x214   : > { %1775 = vrot.lane.b32.xlu0 %v3591_v20, %s2551_s26 }
 0x215   : > { %v1206_v25 = vpop.permute.xlu1 %1205 }
 0x216   : > { %1280 = vst.msk [vmem:[#allocation3 + $0xb0] sm:$0xff] %vm1257_vm5, %v1206_v25  ;;  %v1174_v49 = vpop.permute.xlu0 %1173 }
 0x217   : > { %1550 = vrot.lane.b32.xlu1 %v1485_v41, %s2550_s25  ;;  %1264 = vst.msk [vmem:[#allocation3 + $0x30] sm:$0xff] %vm1257_vm5, %v1174_v49 }
 0x218   : > { %1743 = vrot.lane.b32.xlu0 %v3595_v55, %s2551_s26 }
 0x219   : > { %v1981_v60 = vpop.permute.xlu1 %1980 }
 0x21a   : > { %2054 = vst.msk [vmem:[#allocation3 + $0xb8] sm:$0xff] %vm2030_vm9, %v1981_v60  ;;  %v1949_v58 = vpop.permute.xlu0 %1948 }
 0x21b   : > { %1193 = vrot.lane.b32.xlu1 %v1113_v24, %s2548_s17  ;;  %2038 = vst.msk [vmem:[#allocation3 + $0x38] sm:$0xff] %vm2030_vm9, %v1949_v58 }
 0x21c   : > { %1161 = vrot.lane.b32.xlu0 %v1097_v35, %s2548_s17  ;;  %s2289_s17 = scalar_lea.hbm %s3850_s5, %s2398_s12 }
 0x21d   : > { %v1399_v26 = vpop.permute.xlu1 %1398 }
 0x21e   : > { %1473 = vst.msk [vmem:[#allocation3 + $0xb0] sm:$0xff] %vm1450_vm6, %v1399_v26  ;;  %v1593_v12 = vpop.permute.xlu0 %1592 }
 0x21f   : > { %1968 = vrot.lane.b32.xlu1 %v3607_v46, %s2552_s30  ;;  %1667 = vst.msk [vmem:[#allocation3 + $0xb0] sm:$0xff] %vm1644_vm7, %v1593_v12 }
 0x220   : > { %1936 = vrot.lane.b32.xlu0 %v3617_v43, %s2552_s30 }
 0x221   : > { %v1367_v27 = vpop.permute.xlu1 %1366  ;;  %v2087_v17 = vld [vmem:[#allocation3 + $0xb8] sm:$0xff] }
 0x222   : > { %1457 = vst.msk [vmem:[#allocation3 + $0x30] sm:$0xff] %vm1450_vm6, %v1367_v27  ;;  %2415 = vmatprep.subr.msk.mxu0 %vm2100_vm10, %v2087_v17  ;;  %v1786_v20 = vpop.permute.xlu0 %1785  ;;  %v2071_v7 = vld [vmem:[#allocation3 + $0x38] sm:$0xff] }
 0x223   : > { %1386 = vrot.lane.b32.xlu1 %v1306_v52, %s2549_s23  ;;  %1860 = vst.msk [vmem:[#allocation3 + $0xb0] sm:$0xff] %vm1837_vm8, %v1786_v20  ;;  %2416 = vmatpush3.xpose.msk.msra.mxu0 %vm2100_vm10, %v2071_v7 }
 0x224   : > { %1580 = vrot.lane.b32.xlu0 %v1500_v32, %s2550_s25 }
 0x225   : > { %v1561_v55 = vpop.permute.xlu1 %1560 }
 0x226   : > { %1651 = vst.msk [vmem:[#allocation3 + $0x30] sm:$0xff] %vm1644_vm7, %v1561_v55  ;;  %v1754_v11 = vpop.permute.xlu0 %1753 }
 0x227   : > { %1354 = vrot.lane.b32.xlu1 %v1290_v21, %s2549_s23  ;;  %1844 = vst.msk [vmem:[#allocation3 + $0x30] sm:$0xff] %vm1837_vm8, %v1754_v11  ;;  %s2277_s23 = scalar_lea.sflag [#allocation5], %s215_s8 }
 0x228   : > { %1773 = vrot.lane.b32.xlu0 %v3629_v47, %s2551_s26 }
 0x229   : > { %v1204_v46 = vpop.permute.xlu1 %1203 }
 0x22a   : > { %1279 = vst.msk [vmem:[#allocation3 + $0xa8] sm:$0xff] %vm1257_vm5, %v1204_v46  ;;  %v1172_v31 = vpop.permute.xlu0 %1171 }
 0x22b   : > { %1548 = vrot.lane.b32.xlu1 %v1484_v0, %s2550_s25  ;;  %1263 = vst.msk [vmem:[#allocation3 + $0x28] sm:$0xff] %vm1257_vm5, %v1172_v31  ;;  %s2482_s25 = scalar_lea.vmem %s2292_s14, 128 }
 0x22c   : > { %1966 = vrot.lane.b32.xlu0 %v3645_v63, %s2552_s30  ;;  %p2483_p11 = scmp.ne.s32.totalorder %s2292_s14, %s2482_s25 }
 0x22d   : > { %v1979_v50 = vpop.permute.xlu1 %1978 }
 0x22e   : > { %2053 = vst.msk [vmem:[#allocation3 + $0xb0] sm:$0xff] %vm2030_vm9, %v1979_v50  ;;  %v1947_v48 = vpop.permute.xlu0 %1946  ;;  %p2484_p12 = pnand %p2483_p11, %p2622_p5 }
 0x22f   : > { %1741 = vrot.lane.b32.xlu1 %v3633_v62, %s2551_s26  ;;  %2037 = vst.msk [vmem:[#allocation3 + $0x30] sm:$0xff] %vm2030_vm9, %v1947_v48  ;;  %s2553_s26 = smov [#allocation4]  }
 0x230   : > { %p2485_p13 = pneg %p2484_p12 }
 0x231   : > { %v1397_v54 = vpop.permute.xlu1 %1396 }
 0x232   : > { %1472 = vst.msk [vmem:[#allocation3 + $0xa8] sm:$0xff] %vm1450_vm6, %v1397_v54  ;;  %v1591_v43 = vpop.permute.xlu0 %1590 }
 0x233   : > { %1934 = vrot.lane.b32.xlu1 %v3655_v51, %s2552_s30  ;;  %1666 = vst.msk [vmem:[#allocation3 + $0xa8] sm:$0xff] %vm1644_vm7, %v1591_v43  ;;  %s2486_s30 = sshll.u32 %s2553_s26, 4  ;;  %s2487_s30 = int_to_ptr.vmem [resolvable:$false] %s2486_s30 }
 0x234   : > { %s2488_s22 = scalar_lea.vmem %s2487_s30, 256  ;;  %p2489_p0 = scmp.lt.s32.totalorder %s2292_s14, %s2487_s30 }
 0x235   : > { %v1365_v37 = vpop.permute.xlu1 %1364  ;;  %v2086_v9 = vld [vmem:[#allocation3 + $0xb0] sm:$0xff]  ;;  %p2490_p1 = scmp.lt.s32.totalorder %s2488_s22, %s2482_s25 }
 0x236   : > { %1456 = vst.msk [vmem:[#allocation3 + $0x28] sm:$0xff] %vm1450_vm6, %v1365_v37  ;;  %2417 = vmatprep.subr.msk.mxu0 %vm2100_vm10, %v2086_v9  ;;  %v1784_v1 = vpop.permute.xlu0 %1783  ;;  %v2070_v15 = vld [vmem:[#allocation3 + $0x30] sm:$0xff] }
 0x237   : > { %1859 = vst.msk [vmem:[#allocation3 + $0xa8] sm:$0xff] %vm1837_vm8, %v1784_v1  ;;  %2418 = vmatpush3.xpose.msk.msra.mxu0 %vm2100_vm10, %v2070_v15  ;;  %p2491_p2 = por %p2490_p1, %p2489_p0 }
 0x239   : > { %v1559_v2 = vpop.permute.xlu1 %1558  ;;  %p2492_p3 = pnand %p2491_p2, %p2485_p13 }
 0x23a   : > { %1650 = vst.msk [vmem:[#allocation3 + $0x28] sm:$0xff] %vm1644_vm7, %v1559_v2  ;;  %v1752_v47 = vpop.permute.xlu0 %1751 }
 0x23b   : > { %1843 = vst.msk [vmem:[#allocation3 + $0x28] sm:$0xff] %vm1837_vm8, %v1752_v47 }
 0x23d   : > { %v1202_v56 = vpop.permute.xlu1 %1201 }
 0x23e   : > { %1278 = vst.msk [vmem:[#allocation3 + $0xa0] sm:$0xff] %vm1257_vm5, %v1202_v56  ;;  %v1170_v62 = vpop.permute.xlu0 %1169 }
 0x23f   : > { %1262 = vst.msk [vmem:[#allocation3 + $0x20] sm:$0xff] %vm1257_vm5, %v1170_v62  ;;  %v2096_v62 = vld [vmem:[%s3849_s4] sm:$0xff] }
 0x241   : > { %v1977_v22 = vpop.permute.xlu1 %1976 }
 0x242   : > { %2052 = vst.msk [vmem:[#allocation3 + $0xa8] sm:$0xff] %vm2030_vm9, %v1977_v22  ;;  %v1945_v38 = vpop.permute.xlu0 %1944  ;;  %v2098_v22 = vcombine.high %v2096_v62, %v2096_v62 }
 0x243   : > { %2036 = vst.msk [vmem:[#allocation3 + $0x28] sm:$0xff] %vm2030_vm9, %v1945_v38 }
 0x245   : > { %v1395_v59 = vpop.permute.xlu1 %1394 }
 0x246   : > { %1471 = vst.msk [vmem:[#allocation3 + $0xa0] sm:$0xff] %vm1450_vm6, %v1395_v59  ;;  %v1589_v63 = vpop.permute.xlu0 %1588 }
 0x247   : > { %1665 = vst.msk [vmem:[#allocation3 + $0xa0] sm:$0xff] %vm1644_vm7, %v1589_v63 }
 0x249   : > { %v1363_v30 = vpop.permute.xlu1 %1362  ;;  %v2085_v3 = vld [vmem:[#allocation3 + $0xa8] sm:$0xff] }
 0x24a   : > { %1455 = vst.msk [vmem:[#allocation3 + $0x20] sm:$0xff] %vm1450_vm6, %v1363_v30  ;;  %2419 = vmatprep.subr.msk.mxu0 %vm2100_vm10, %v2085_v3  ;;  %v1782_v5 = vpop.permute.xlu0 %1781  ;;  %v2069_v53 = vld [vmem:[#allocation3 + $0x28] sm:$0xff] }
 0x24b   : > { %1858 = vst.msk [vmem:[#allocation3 + $0xa0] sm:$0xff] %vm1837_vm8, %v1782_v5  ;;  %2420 = vmatpush3.xpose.msk.msra.mxu0 %vm2100_vm10, %v2069_v53 }
 0x24d   : > { %v1557_v45 = vpop.permute.xlu1 %1556 }
 0x24e   : > { %1649 = vst.msk [vmem:[#allocation3 + $0x20] sm:$0xff] %vm1644_vm7, %v1557_v45  ;;  %v1750_v51 = vpop.permute.xlu0 %1749 }
 0x24f   : > { %1842 = vst.msk [vmem:[#allocation3 + $0x20] sm:$0xff] %vm1837_vm8, %v1750_v51 }
 0x251   : > { %v1200_v34 = vpop.permute.xlu1 %1199 }
 0x252   : > { %1277 = vst.msk [vmem:[#allocation3 + $0x98] sm:$0xff] %vm1257_vm5, %v1200_v34  ;;  %v1168_v19 = vpop.permute.xlu0 %1167 }
 0x253   : > { %1261 = vst.msk [vmem:[#allocation3 + $0x18] sm:$0xff] %vm1257_vm5, %v1168_v19 }
 0x255   : > { %v1975_v36 = vpop.permute.xlu1 %1974 }
 0x256   : > { %2051 = vst.msk [vmem:[#allocation3 + $0xa0] sm:$0xff] %vm2030_vm9, %v1975_v36  ;;  %v1943_v29 = vpop.permute.xlu0 %1942 }
 0x257   : > { %2035 = vst.msk [vmem:[#allocation3 + $0x20] sm:$0xff] %vm2030_vm9, %v1943_v29 }
 0x259   : > { %v1393_v8 = vpop.permute.xlu1 %1392 }
 0x25a   : > { %1470 = vst.msk [vmem:[#allocation3 + $0x98] sm:$0xff] %vm1450_vm6, %v1393_v8  ;;  %v1587_v16 = vpop.permute.xlu0 %1586 }
 0x25b   : > { %1664 = vst.msk [vmem:[#allocation3 + $0x98] sm:$0xff] %vm1644_vm7, %v1587_v16 }
 0x25d   : > { %v1361_v61 = vpop.permute.xlu1 %1360  ;;  %v2084_v57 = vld [vmem:[#allocation3 + $0xa0] sm:$0xff] }
 0x25e   : > { %1454 = vst.msk [vmem:[#allocation3 + $0x18] sm:$0xff] %vm1450_vm6, %v1361_v61  ;;  %2421 = vmatprep.subr.msk.mxu0 %vm2100_vm10, %v2084_v57  ;;  %v1780_v13 = vpop.permute.xlu0 %1779  ;;  %v2068_v40 = vld [vmem:[#allocation3 + $0x20] sm:$0xff] }
 0x25f   : > { %1857 = vst.msk [vmem:[#allocation3 + $0x98] sm:$0xff] %vm1837_vm8, %v1780_v13  ;;  %2422 = vmatpush3.xpose.msk.msra.mxu0 %vm2100_vm10, %v2068_v40 }
 0x261   : > { %v1555_v10 = vpop.permute.xlu1 %1554 }
 0x262   : > { %1648 = vst.msk [vmem:[#allocation3 + $0x18] sm:$0xff] %vm1644_vm7, %v1555_v10  ;;  %v1748_v28 = vpop.permute.xlu0 %1747 }
 0x263   : > { %1841 = vst.msk [vmem:[#allocation3 + $0x18] sm:$0xff] %vm1837_vm8, %v1748_v28 }
 0x265   : > { %v1198_v33 = vpop.permute.xlu1 %1197 }
 0x266   : > { %1276 = vst.msk [vmem:[#allocation3 + $0x90] sm:$0xff] %vm1257_vm5, %v1198_v33  ;;  %v1166_v14 = vpop.permute.xlu0 %1165 }
 0x267   : > { %1260 = vst.msk [vmem:[#allocation3 + $0x10] sm:$0xff] %vm1257_vm5, %v1166_v14 }
 0x269   : > { %v1973_v6 = vpop.permute.xlu1 %1972 }
 0x26a   : > { %2050 = vst.msk [vmem:[#allocation3 + $0x98] sm:$0xff] %vm2030_vm9, %v1973_v6  ;;  %v1941_v23 = vpop.permute.xlu0 %1940 }
 0x26b   : > { %2034 = vst.msk [vmem:[#allocation3 + $0x18] sm:$0xff] %vm2030_vm9, %v1941_v23 }
 0x26d   : > { %v1391_v18 = vpop.permute.xlu1 %1390 }
 0x26e   : > { %1469 = vst.msk [vmem:[#allocation3 + $0x90] sm:$0xff] %vm1450_vm6, %v1391_v18  ;;  %v1585_v39 = vpop.permute.xlu0 %1584 }
 0x26f   : > { %1663 = vst.msk [vmem:[#allocation3 + $0x90] sm:$0xff] %vm1644_vm7, %v1585_v39 }
 0x271   : > { %v1359_v44 = vpop.permute.xlu1 %1358  ;;  %v2083_v42 = vld [vmem:[#allocation3 + $0x98] sm:$0xff] }
 0x272   : > { %1453 = vst.msk [vmem:[#allocation3 + $0x10] sm:$0xff] %vm1450_vm6, %v1359_v44  ;;  %2423 = vmatprep.subr.msk.mxu0 %vm2100_vm10, %v2083_v42  ;;  %v1778_v41 = vpop.permute.xlu0 %1777  ;;  %v2067_v25 = vld [vmem:[#allocation3 + $0x18] sm:$0xff] }
 0x273   : > { %1856 = vst.msk [vmem:[#allocation3 + $0x90] sm:$0xff] %vm1837_vm8, %v1778_v41  ;;  %2424 = vmatpush3.xpose.msk.msra.mxu0 %vm2100_vm10, %v2067_v25 }
 0x275   : > { %v1553_v49 = vpop.permute.xlu1 %1552 }
 0x276   : > { %1647 = vst.msk [vmem:[#allocation3 + $0x10] sm:$0xff] %vm1644_vm7, %v1553_v49  ;;  %v1746_v24 = vpop.permute.xlu0 %1745 }
 0x277   : > { %1840 = vst.msk [vmem:[#allocation3 + $0x10] sm:$0xff] %vm1837_vm8, %v1746_v24 }
 0x279   : > { %v1196_v60 = vpop.permute.xlu1 %1195 }
 0x27a   : > { %1275 = vst.msk [vmem:[#allocation3 + $0x88] sm:$0xff] %vm1257_vm5, %v1196_v60  ;;  %v1164_v35 = vpop.permute.xlu0 %1163 }
 0x27b   : > { %1259 = vst.msk [vmem:[#allocation3 + $0x8] sm:$0xff] %vm1257_vm5, %v1164_v35 }
 0x27d   : > { %v1971_v58 = vpop.permute.xlu1 %1970 }
 0x27e   : > { %2049 = vst.msk [vmem:[#allocation3 + $0x90] sm:$0xff] %vm2030_vm9, %v1971_v58  ;;  %v1939_v26 = vpop.permute.xlu0 %1938 }
 0x27f   : > { %2033 = vst.msk [vmem:[#allocation3 + $0x10] sm:$0xff] %vm2030_vm9, %v1939_v26 }
 0x281   : > { %v1389_v12 = vpop.permute.xlu1 %1388 }
 0x282   : > { %1468 = vst.msk [vmem:[#allocation3 + $0x88] sm:$0xff] %vm1450_vm6, %v1389_v12  ;;  %v1583_v52 = vpop.permute.xlu0 %1582 }
 0x283   : > { %1662 = vst.msk [vmem:[#allocation3 + $0x88] sm:$0xff] %vm1644_vm7, %v1583_v52 }
 0x285   : > { %v1357_v27 = vpop.permute.xlu1 %1356  ;;  %v2082_v17 = vld [vmem:[#allocation3 + $0x90] sm:$0xff] }
 0x286   : > { %1452 = vst.msk [vmem:[#allocation3 + $0x8] sm:$0xff] %vm1450_vm6, %v1357_v27  ;;  %2425 = vmatprep.subr.msk.mxu0 %vm2100_vm10, %v2082_v17  ;;  %v1776_v32 = vpop.permute.xlu0 %1775  ;;  %v2066_v20 = vld [vmem:[#allocation3 + $0x10] sm:$0xff] }
 0x287   : > { %1855 = vst.msk [vmem:[#allocation3 + $0x88] sm:$0xff] %vm1837_vm8, %v1776_v32  ;;  %2426 = vmatpush3.xpose.msk.msra.mxu0 %vm2100_vm10, %v2066_v20 }
 0x289   : > { %v1551_v7 = vpop.permute.xlu1 %1550 }
 0x28a   : > { %1646 = vst.msk [vmem:[#allocation3 + $0x8] sm:$0xff] %vm1644_vm7, %v1551_v7  ;;  %v1744_v21 = vpop.permute.xlu0 %1743 }
 0x28b   : > { %1839 = vst.msk [vmem:[#allocation3 + $0x8] sm:$0xff] %vm1837_vm8, %v1744_v21 }
 0x28d   : > { %v1194_v55 = vpop.permute.xlu1 %1193 }
 0x28e   : > { %1274 = vst.msk [vmem:[#allocation3 + $0x80] sm:$0xff] %vm1257_vm5, %v1194_v55  ;;  %v1162_v11 = vpop.permute.xlu0 %1161 }
 0x28f   : > { %1258 = vst.msk [vmem:[#allocation3] sm:$0xff] %vm1257_vm5, %v1162_v11 }
 0x291   : > { %v1969_v0 = vpop.permute.xlu1 %1968 }
 0x292   : > { %2048 = vst.msk [vmem:[#allocation3 + $0x88] sm:$0xff] %vm2030_vm9, %v1969_v0  ;;  %v1937_v46 = vpop.permute.xlu0 %1936 }
 0x293   : > { %2032 = vst.msk [vmem:[#allocation3 + $0x8] sm:$0xff] %vm2030_vm9, %v1937_v46 }
 0x295   : > { %v1387_v31 = vpop.permute.xlu1 %1386 }
 0x296   : > { %1467 = vst.msk [vmem:[#allocation3 + $0x80] sm:$0xff] %vm1450_vm6, %v1387_v31  ;;  %v1581_v50 = vpop.permute.xlu0 %1580 }
 0x297   : > { %1661 = vst.msk [vmem:[#allocation3 + $0x80] sm:$0xff] %vm1644_vm7, %v1581_v50 }
 0x299   : > { %v1355_v48 = vpop.permute.xlu1 %1354  ;;  %v2081_v54 = vld [vmem:[#allocation3 + $0x88] sm:$0xff] }
 0x29a   : > { %1451 = vst.msk [vmem:[#allocation3] sm:$0xff] %vm1450_vm6, %v1355_v48  ;;  %2427 = vmatprep.subr.msk.mxu0 %vm2100_vm10, %v2081_v54  ;;  %v1774_v43 = vpop.permute.xlu0 %1773  ;;  %v2065_v37 = vld [vmem:[#allocation3 + $0x8] sm:$0xff] }
 0x29b   : > { %1854 = vst.msk [vmem:[#allocation3 + $0x80] sm:$0xff] %vm1837_vm8, %v1774_v43  ;;  %2428 = vmatpush3.xpose.msk.msra.mxu0 %vm2100_vm10, %v2065_v37 }
 0x29d   : > { %v1549_v9 = vpop.permute.xlu1 %1548 }
 0x29e   : > { %1645 = vst.msk [vmem:[#allocation3] sm:$0xff] %vm1644_vm7, %v1549_v9  ;;  %v1967_v1 = vpop.permute.xlu0 %1966 }
 0x29f   : > { %2047 = vst.msk [vmem:[#allocation3 + $0x80] sm:$0xff] %vm2030_vm9, %v1967_v1 }
 0x2a1   : > { %v1742_v15 = vpop.permute.xlu1 %1741 }
 0x2a2   : > { %1838 = vst.msk [vmem:[#allocation3] sm:$0xff] %vm1837_vm8, %v1742_v15 }
 0x2a5   : > { %v1935_v2 = vpop.permute.xlu1 %1934 }
 0x2a6   : > { %2031 = vst.msk [vmem:[#allocation3] sm:$0xff] %vm2030_vm9, %v1935_v2  ;;  %v2080_v47 = vld [vmem:[#allocation3 + $0x80] sm:$0xff] }
 0x2a7   : > { %2429 = vmatprep.subr.msk.mxu0 %vm2100_vm10, %v2080_v47 }
 0x2ad   : > { %v2064_v56 = vld [vmem:[#allocation3] sm:$0xff] }
 0x2ae   : > { %2430 = vmatpush3.xpose.msk.msra.mxu0 %vm2100_vm10, %v2064_v56 }
 0x2b1   : > { %2432 = vmatmul.mubr.msk.f32.vlgmr.msra.gmra.mxu0 %vm2100_vm10, %v3725_v4 }
 0x371   : > { %v2266_v38 = vpop.f32.mrf.mxu0 }
 0x372   : > { %v2267_v63 = vadd.f32 %v2266_v38, %v2096_v62 }
 0x373   : > { %v2268_v59 = vpop.f32.mrf.mxu0 }
 0x374   : > { %v2269_v30 = vadd.f32 %v2268_v59, %v2098_v22 }
 0x376   : > { %v2273_v3 = vcombine.low %v2267_v63, %v2269_v30 }
 0x378   : > { %2275 = vst [vmem:[%s217_s13] sm:$0xff] %v2273_v3 }
 0x379   : > { %2495 = shalt.err (!%p2492_p3)
}
 0x37a   : > { %s2496_s6 = scalar_lea.hbm %s2289_s17, 128  ;;  %s2500_s9 = scalar_lea.hbm %s3850_s5, 256 }
 0x37b   : > { %p2497_p4 = scmp.ne.s32.totalorder %s2289_s17, %s2496_s6  ;;  %p2501_p9 = scmp.lt.s32.totalorder %s2289_s17, %s3850_s5 }
 0x37c   : > { %p2502_p10 = scmp.lt.s32.totalorder %s2500_s9, %s2496_s6 }
 0x37d   : > { %p2498_p7 = pnand %p2497_p4, %p2622_p5 }
 0x37e   : > { %p2503_p11 = por %p2502_p10, %p2501_p9 }
 0x37f   : > { %p2499_p8 = pneg %p2498_p7 }
 0x381   : > { %p2504_p12 = pnand %p2503_p11, %p2499_p8 }
 0x383   : > { %2507 = shalt.err (!%p2504_p12)
}
 0x384   : > { %2433 = dma.vmem_to_hbm [thread:$0]  (%p2622_p5), %s2292_s14, 128, %s2289_s17, %s2277_s23  }
 0x385 PF: > { %p2439_p13 = scmp.ge.s32.totalorder %s2542_s21, 2  ;;  %s2303_s12 = sand.u32 1, %s2530_s18  }
 0x386   : > { %s2304_s13 = scalar_lea.sflag [#allocation5], %s2303_s12 }
 0x387   : > { %p2436_p0 = pnand %p2439_p13, %p2626_p6 }
 0x389   : > { %p2437_p1 = pneg %p2436_p0 }
 0x38b   : > { %2525 = dma.done.wait (%p2437_p1), %s2304_s13, 128  }
 0x38c   : > { %2527 = vsyncadd (%p2437_p1), %s2304_s13, 4294967168  ;;  %p15_p2 = scmp.ge.s32.totalorder %s2609_s24, 4   ;;  %s3853_s18 = smov %s2534_s19 }
 0x38d   : > { %s3854_s19 = smov %s2538_s20  ;;  %s3855_s20 = smov %s2620_s27 }
 0x38e   : > { %s3856_s21 = smov %s2609_s24  ;;  %17 = sbr.rel (!%p15_p2) target bundleno = 3 (0x3), region = 77 }
 0x393   :  { %2309 = vsyncpa [#allocation5], 1 }
 0x394   :  { %2311 = vsyncpa [#allocation5 + $0x1], 1 }

</bundles_post_ra>
